<compile_context>
chip_gen: v6e
topology: v6e:2x2x1
jax: 0.10.0
libtpu: 0.0.40
codegen_flags: <defaults>
</compile_context>

<pallas_src>
import jax
import jax.numpy as jnp
from jax.experimental import pallas as pl
from jax.experimental.pallas import tpu as pltpu

LANE = 128


def _rup(n, m=LANE):
    return ((n + m - 1) // m) * m


# -----------------------------------------------------------------------------
# Pallas kernel: forward pass for one packed block of B graphs per grid step.
# -----------------------------------------------------------------------------
def graph_gcn_kernel(a_ref, x_ref,
                     w1_ref, b1_ref,
                     w2_ref, b2_ref,
                     w3_ref, b3_ref,
                     wl1_ref, wl2_ref, wl3_ref, bl_ref,
                     pool_ref,
                     out_ref):
    a = a_ref[0]            # [BN, BN] bf16 block-diagonal normalized adjacency
    x = x_ref[0]            # [BN, F]  bf16 packed node features
    pool = pool_ref[...]    # [B, BN]  bf16 per-graph mean-pool matrix (1/N)

    def gcn_layer(h_bf16, w_ref, b_ref):
        # GCNConv: A_hat @ (H @ W) + b  -- bf16 operands, f32 accumulation.
        hw = jnp.dot(h_bf16, w_ref[...], preferred_element_type=jnp.float32)
        h = jnp.dot(a, hw.astype(jnp.bfloat16),
                    preferred_element_type=jnp.float32) + b_ref[...]
        # F.normalize(h, p=2, dim=1) via EUP rsqrt on the clamped squared sum.
        ss = jnp.sum(h * h, axis=1, keepdims=True)
        h = h * jax.lax.rsqrt(jnp.maximum(ss, 1e-24))
        # ReLU, then cast once for the next MXU consumer.
        return jnp.maximum(h, 0.0).astype(jnp.bfloat16)

    h1 = gcn_layer(x, w1_ref, b1_ref)     # [BN, Hp] bf16
    h2 = gcn_layer(h1, w2_ref, b2_ref)    # [BN, Hp]
    h3 = gcn_layer(h2, w3_ref, b3_ref)    # [BN, Hp]

    # global_mean_pool per graph: one MXU dot with the fixed pooling matrix.
    p1 = jnp.dot(pool, h1, preferred_element_type=jnp.float32)   # [B, Hp] f32
    p2 = jnp.dot(pool, h2, preferred_element_type=jnp.float32)
    p3 = jnp.dot(pool, h3, preferred_element_type=jnp.float32)

    # Final Linear over concat([h1,h2,h3]) == sum of three dots against the
    # row-slices of Wl (no lane-axis concat / relayout).
    out_ref[...] = (
        jnp.dot(p1.astype(jnp.bfloat16), wl1_ref[...],
                preferred_element_type=jnp.float32)
        + jnp.dot(p2.astype(jnp.bfloat16), wl2_ref[...],
                  preferred_element_type=jnp.float32)
        + jnp.dot(p3.astype(jnp.bfloat16), wl3_ref[...],
                  preferred_element_type=jnp.float32)
        + bl_ref[...])                                           # [B, Cp] f32


# -----------------------------------------------------------------------------
# One-time parameter preparation: lane-pad hidden/class dims to 128, split the
# final Linear weight into its three per-layer row blocks, cast MXU operands to
# bf16. Done ONCE, not per forward call.
# -----------------------------------------------------------------------------
def prepare_params(params, *, num_features, hidden_size, num_classes):
    w1, b1, w2, b2, w3, b3, wl, bl = params
    F, H, C = num_features, hidden_size, num_classes
    Hp, Cp = _rup(H), _rup(C)

    def pad_to(arr, shape):
        pads = [(0, t - s) for s, t in zip(arr.shape, shape)]
        return jnp.pad(arr, pads)

    prep = dict(
        w1=pad_to(w1, (F, Hp)).astype(jnp.bfloat16),
        b1=pad_to(b1, (1, Hp)).astype(jnp.float32),
        w2=pad_to(w2, (Hp, Hp)).astype(jnp.bfloat16),
        b2=pad_to(b2, (1, Hp)).astype(jnp.float32),
        w3=pad_to(w3, (Hp, Hp)).astype(jnp.bfloat16),
        b3=pad_to(b3, (1, Hp)).astype(jnp.float32),
        wl1=pad_to(wl[:H], (Hp, Cp)).astype(jnp.bfloat16),
        wl2=pad_to(wl[H:2 * H], (Hp, Cp)).astype(jnp.bfloat16),
        wl3=pad_to(wl[2 * H:3 * H], (Hp, Cp)).astype(jnp.bfloat16),
        bl=pad_to(bl, (1, Cp)).astype(jnp.float32),
        Cp=Cp, C=C,
    )
    return prep


# -----------------------------------------------------------------------------
# Wrapper: pack B graphs per grid step (block-diag adjacency + stacked X),
# batch packed blocks over a parallel grid axis.
# -----------------------------------------------------------------------------
def graph_gcn_forward(a_hats, x, prep, *, graphs_per_block=16):
    """a_hats: [G, N, N] dense normalized adjacencies; x: [G, N, F]."""
    G, N, F = x.shape
    B = graphs_per_block
    assert G % B == 0, "demo assumes G divisible by graphs_per_block"
    NB = G // B
    BN = B * N
    Cp, C = prep["Cp"], prep["C"]

    # Packed node features [NB, B*N, F]  (no feature-lane padding).
    x_packed = x.reshape(NB, BN, F).astype(jnp.bfloat16)

    # Block-diagonal normalized adjacency per block: [NB, B*N, B*N].
    ar = a_hats.reshape(NB, B, N, N)
    eye = jnp.eye(B, dtype=a_hats.dtype)
    a_blocks = ar[:, :, None, :, :] * eye[None, :, :, None, None]
    a_blocks = (a_blocks.transpose(0, 1, 3, 2, 4)
                .reshape(NB, BN, BN).astype(jnp.bfloat16))

    # Per-graph mean-pool matrix P [B, B*N]: P[g, g*N:(g+1)*N] = 1/N.
    # TODO(synk): if graphs are padded to a common N with dummy nodes (ragged
    # sizes), P and the adjacency normalization must use true node counts.
    pool = (jnp.repeat(jnp.eye(B, dtype=jnp.float32), N, axis=1) / N
            ).astype(jnp.bfloat16)

    def inv_spec(arr):
        nd = arr.ndim
        return pl.BlockSpec(arr.shape, lambda i, _nd=nd: (0,) * _nd)

    in_specs = [
        pl.BlockSpec((1, BN, BN), lambda i: (i, 0, 0)),   # adjacency block
        pl.BlockSpec((1, BN, F), lambda i: (i, 0, 0)),    # packed features
        inv_spec(prep["w1"]), inv_spec(prep["b1"]),       # weights stay
        inv_spec(prep["w2"]), inv_spec(prep["b2"]),       # resident in VMEM
        inv_spec(prep["w3"]), inv_spec(prep["b3"]),
        inv_spec(prep["wl1"]), inv_spec(prep["wl2"]),
        inv_spec(prep["wl3"]), inv_spec(prep["bl"]),
        inv_spec(pool),
    ]

    out = pl.pallas_call(
        graph_gcn_kernel,
        out_shape=jax.ShapeDtypeStruct((G, Cp), jnp.float32),
        grid=(NB,),
        in_specs=in_specs,
        out_specs=pl.BlockSpec((B, Cp), lambda i: (i, 0)),
        compiler_params=pltpu.CompilerParams(
            dimension_semantics=("parallel",)),
    )(a_blocks, x_packed,
      prep["w1"], prep["b1"], prep["w2"], prep["b2"], prep["w3"], prep["b3"],
      prep["wl1"], prep["wl2"], prep["wl3"], prep["bl"], pool)

    return out[:, :C]


# -----------------------------------------------------------------------------
# Glue: dense symmetric-normalized adjacency from edge_index (PyG GCN norm).
# -----------------------------------------------------------------------------
def build_norm_adj(edge_index, num_nodes):
    src = edge_index[0]
    dst = edge_index[1]
    loop = jnp.arange(num_nodes, dtype=edge_index.dtype)
    src = jnp.concatenate([src, loop])
    dst = jnp.concatenate([dst, loop])
    # A[dst, src] = 1 (message src -> dst), self loops included.
    a = jnp.zeros((num_nodes, num_nodes), jnp.float32).at[dst, src].add(1.0)
    deg = jnp.sum(a, axis=1)                               # in-degree + 1
    dinv = jnp.where(deg > 0.0, 1.0 / jnp.sqrt(deg), 0.0)
    return dinv[:, None] * a * dinv[None, :]               # D^-1/2 (A+I) D^-1/2


# -----------------------------------------------------------------------------
# Deterministic parameter init (glorot-ish weights, zero biases).
# Weights are stored [in_dim, out_dim] (transposed vs torch Linear's [out, in]).
# -----------------------------------------------------------------------------
def init_params(key, num_features, num_classes, hidden_size):
    ks = jax.random.split(key, 4)

    def glorot(k, fan_in, fan_out):
        lim = jnp.sqrt(6.0 / (fan_in + fan_out))
        return jax.random.uniform(k, (fan_in, fan_out), jnp.float32, -lim, lim)

    w1 = glorot(ks[0], num_features, hidden_size)
    b1 = jnp.zeros((1, hidden_size), jnp.float32)
    w2 = glorot(ks[1], hidden_size, hidden_size)
    b2 = jnp.zeros((1, hidden_size), jnp.float32)
    w3 = glorot(ks[2], hidden_size, hidden_size)
    b3 = jnp.zeros((1, hidden_size), jnp.float32)
    wl = glorot(ks[3], hidden_size * 3, num_classes)        # stored [in, out]
    bl = jnp.zeros((1, num_classes), jnp.float32)
    return (w1, b1, w2, b2, w3, b3, wl, bl)


if __name__ == "__main__":
    key = jax.random.PRNGKey(0)
    k_x, k_p = jax.random.split(key)

    num_graphs = 32          # 2 packed blocks of 16 graphs -> grid=(2,)
    num_nodes = 8
    num_features = 16
    hidden_size = 32
    num_classes = 4
    graphs_per_block = 16    # B*N = 128 rows per MXU contraction

    # Batched node features [G, N, F]
    x = jax.random.normal(k_x, (num_graphs, num_nodes, num_features),
                          jnp.float32)

    # Small undirected ring graph as edge_index [2, E] (same topology per graph)
    src = jnp.arange(num_nodes, dtype=jnp.int32)
    dst = (src + 1) % num_nodes
    edge_index = jnp.stack(
        [jnp.concatenate([src, dst]), jnp.concatenate([dst, src])], axis=0)

    a_hat = build_norm_adj(edge_index, num_nodes)
    a_hats = jnp.asarray(
        jnp.broadcast_to(a_hat, (num_graphs, num_nodes, num_nodes)))

    params = init_params(k_p, num_features, num_classes, hidden_size)
    prep = prepare_params(params, num_features=num_features,
                          hidden_size=hidden_size, num_classes=num_classes)

    out = graph_gcn_forward(a_hats, x, prep,
                            graphs_per_block=graphs_per_block)
    out = jax.block_until_ready(out)
    assert out.shape == (num_graphs, num_classes)
    print("KERNEL_OK")
</pallas_src>

<mosaic_0001>
module attributes {stable_mosaic.version = 11 : i64} {
  func.func @graph_gcn_kernel(%arg0: i32, %arg1: memref<1x128x128xbf16, #tpu.memory_space<vmem>>, %arg2: memref<1x128x16xbf16, #tpu.memory_space<vmem>>, %arg3: memref<16x128xbf16, #tpu.memory_space<vmem>>, %arg4: memref<1x128xf32, #tpu.memory_space<vmem>>, %arg5: memref<128x128xbf16, #tpu.memory_space<vmem>>, %arg6: memref<1x128xf32, #tpu.memory_space<vmem>>, %arg7: memref<128x128xbf16, #tpu.memory_space<vmem>>, %arg8: memref<1x128xf32, #tpu.memory_space<vmem>>, %arg9: memref<128x128xbf16, #tpu.memory_space<vmem>>, %arg10: memref<128x128xbf16, #tpu.memory_space<vmem>>, %arg11: memref<128x128xbf16, #tpu.memory_space<vmem>>, %arg12: memref<1x128xf32, #tpu.memory_space<vmem>>, %arg13: memref<16x128xbf16, #tpu.memory_space<vmem>>, %arg14: memref<16x128xf32, #tpu.memory_space<vmem>>) attributes {dimension_semantics = [#tpu.dimension_semantics<parallel>], iteration_bounds = array<i64: 2>, scalar_prefetch = 0 : i64, scratch_operands = 0 : i64, tpu.core_type = #tpu.core_type<tc>, window_params = [{transform_indices = @transform_0, window_bounds = array<i64: 1, 128, 128>}, {transform_indices = @transform_1, window_bounds = array<i64: 1, 128, 16>}, {pipeline_mode = #tpu.pipeline_mode<synchronous>, transform_indices = @transform_2, window_bounds = array<i64: 16, 128>}, {pipeline_mode = #tpu.pipeline_mode<synchronous>, transform_indices = @transform_3, window_bounds = array<i64: 1, 128>}, {pipeline_mode = #tpu.pipeline_mode<synchronous>, transform_indices = @transform_4, window_bounds = array<i64: 128, 128>}, {pipeline_mode = #tpu.pipeline_mode<synchronous>, transform_indices = @transform_5, window_bounds = array<i64: 1, 128>}, {pipeline_mode = #tpu.pipeline_mode<synchronous>, transform_indices = @transform_6, window_bounds = array<i64: 128, 128>}, {pipeline_mode = #tpu.pipeline_mode<synchronous>, transform_indices = @transform_7, window_bounds = array<i64: 1, 128>}, {pipeline_mode = #tpu.pipeline_mode<synchronous>, transform_indices = @transform_8, window_bounds = array<i64: 128, 128>}, {pipeline_mode = #tpu.pipeline_mode<synchronous>, transform_indices = @transform_9, window_bounds = array<i64: 128, 128>}, {pipeline_mode = #tpu.pipeline_mode<synchronous>, transform_indices = @transform_10, window_bounds = array<i64: 128, 128>}, {pipeline_mode = #tpu.pipeline_mode<synchronous>, transform_indices = @transform_11, window_bounds = array<i64: 1, 128>}, {pipeline_mode = #tpu.pipeline_mode<synchronous>, transform_indices = @transform_12, window_bounds = array<i64: 16, 128>}, {transform_indices = @transform_13, window_bounds = array<i64: 16, 128>}]} {
    %c0 = arith.constant 0 : index
    %c0_0 = arith.constant 0 : index
    %c0_1 = arith.constant 0 : index
    %0 = vector.load %arg1[%c0, %c0_0, %c0_1] : memref<1x128x128xbf16, #tpu.memory_space<vmem>>, vector<1x128x128xbf16>
    %1 = vector.shape_cast %0 : vector<1x128x128xbf16> to vector<128x128xbf16>
    %c0_2 = arith.constant 0 : index
    %c0_3 = arith.constant 0 : index
    %c0_4 = arith.constant 0 : index
    %2 = vector.load %arg2[%c0_2, %c0_3, %c0_4] : memref<1x128x16xbf16, #tpu.memory_space<vmem>>, vector<1x128x16xbf16>
    %3 = vector.shape_cast %2 : vector<1x128x16xbf16> to vector<128x16xbf16>
    %c0_5 = arith.constant 0 : index
    %c0_6 = arith.constant 0 : index
    %4 = vector.load %arg13[%c0_5, %c0_6] : memref<16x128xbf16, #tpu.memory_space<vmem>>, vector<16x128xbf16>
    %c0_7 = arith.constant 0 : index
    %c0_8 = arith.constant 0 : index
    %5 = vector.load %arg3[%c0_7, %c0_8] : memref<16x128xbf16, #tpu.memory_space<vmem>>, vector<16x128xbf16>
    %cst = arith.constant dense<0.000000e+00> : vector<128x128xf32>
    %6 = tpu.matmul %3, %5, %cst {dimension_numbers = #tpu.dot_dimension_numbers<[1], [0], [0], [1], [0, 0, 1, 1], [], []>} : vector<128x16xbf16>, vector<16x128xbf16>, vector<128x128xf32> -> vector<128x128xf32>
    %7 = arith.truncf %6 : vector<128x128xf32> to vector<128x128xbf16>
    %cst_9 = arith.constant dense<0.000000e+00> : vector<128x128xf32>
    %8 = tpu.matmul %1, %7, %cst_9 {dimension_numbers = #tpu.dot_dimension_numbers<[1], [0], [0], [1], [0, 0, 1, 1], [], []>} : vector<128x128xbf16>, vector<128x128xbf16>, vector<128x128xf32> -> vector<128x128xf32>
    %c0_10 = arith.constant 0 : index
    %c0_11 = arith.constant 0 : index
    %9 = vector.load %arg4[%c0_10, %c0_11] : memref<1x128xf32, #tpu.memory_space<vmem>>, vector<1x128xf32>
    %10 = vector.broadcast %9 : vector<1x128xf32> to vector<128x128xf32>
    %11 = arith.addf %8, %10 : vector<128x128xf32>
    %12 = arith.mulf %11, %11 : vector<128x128xf32>
    %cst_12 = arith.constant dense<0.000000e+00> : vector<128xf32>
    %13 = vector.multi_reduction <add>, %12, %cst_12 [1] : vector<128x128xf32> to vector<128xf32>
    %14 = vector.shape_cast %13 : vector<128xf32> to vector<128x1xf32>
    %cst_13 = arith.constant 1.000000e-24 : f32
    %15 = vector.broadcast %cst_13 : f32 to vector<128x1xf32>
    %16 = arith.maximumf %14, %15 : vector<128x1xf32>
    %17 = math.rsqrt %16 : vector<128x1xf32>
    %18 = vector.broadcast %17 : vector<128x1xf32> to vector<128x128xf32>
    %19 = arith.mulf %11, %18 : vector<128x128xf32>
    %cst_14 = arith.constant 0.000000e+00 : f32
    %20 = vector.broadcast %cst_14 : f32 to vector<128x128xf32>
    %21 = arith.maximumf %19, %20 : vector<128x128xf32>
    %22 = arith.truncf %21 : vector<128x128xf32> to vector<128x128xbf16>
    %c0_15 = arith.constant 0 : index
    %c0_16 = arith.constant 0 : index
    %23 = vector.load %arg5[%c0_15, %c0_16] : memref<128x128xbf16, #tpu.memory_space<vmem>>, vector<128x128xbf16>
    %cst_17 = arith.constant dense<0.000000e+00> : vector<128x128xf32>
    %24 = tpu.matmul %22, %23, %cst_17 {dimension_numbers = #tpu.dot_dimension_numbers<[1], [0], [0], [1], [0, 0, 1, 1], [], []>} : vector<128x128xbf16>, vector<128x128xbf16>, vector<128x128xf32> -> vector<128x128xf32>
    %25 = arith.truncf %24 : vector<128x128xf32> to vector<128x128xbf16>
    %cst_18 = arith.constant dense<0.000000e+00> : vector<128x128xf32>
    %26 = tpu.matmul %1, %25, %cst_18 {dimension_numbers = #tpu.dot_dimension_numbers<[1], [0], [0], [1], [0, 0, 1, 1], [], []>} : vector<128x128xbf16>, vector<128x128xbf16>, vector<128x128xf32> -> vector<128x128xf32>
    %c0_19 = arith.constant 0 : index
    %c0_20 = arith.constant 0 : index
    %27 = vector.load %arg6[%c0_19, %c0_20] : memref<1x128xf32, #tpu.memory_space<vmem>>, vector<1x128xf32>
    %28 = vector.broadcast %27 : vector<1x128xf32> to vector<128x128xf32>
    %29 = arith.addf %26, %28 : vector<128x128xf32>
    %30 = arith.mulf %29, %29 : vector<128x128xf32>
    %cst_21 = arith.constant dense<0.000000e+00> : vector<128xf32>
    %31 = vector.multi_reduction <add>, %30, %cst_21 [1] : vector<128x128xf32> to vector<128xf32>
    %32 = vector.shape_cast %31 : vector<128xf32> to vector<128x1xf32>
    %cst_22 = arith.constant 1.000000e-24 : f32
    %33 = vector.broadcast %cst_22 : f32 to vector<128x1xf32>
    %34 = arith.maximumf %32, %33 : vector<128x1xf32>
    %35 = math.rsqrt %34 : vector<128x1xf32>
    %36 = vector.broadcast %35 : vector<128x1xf32> to vector<128x128xf32>
    %37 = arith.mulf %29, %36 : vector<128x128xf32>
    %cst_23 = arith.constant 0.000000e+00 : f32
    %38 = vector.broadcast %cst_23 : f32 to vector<128x128xf32>
    %39 = arith.maximumf %37, %38 : vector<128x128xf32>
    %40 = arith.truncf %39 : vector<128x128xf32> to vector<128x128xbf16>
    %c0_24 = arith.constant 0 : index
    %c0_25 = arith.constant 0 : index
    %41 = vector.load %arg7[%c0_24, %c0_25] : memref<128x128xbf16, #tpu.memory_space<vmem>>, vector<128x128xbf16>
    %cst_26 = arith.constant dense<0.000000e+00> : vector<128x128xf32>
    %42 = tpu.matmul %40, %41, %cst_26 {dimension_numbers = #tpu.dot_dimension_numbers<[1], [0], [0], [1], [0, 0, 1, 1], [], []>} : vector<128x128xbf16>, vector<128x128xbf16>, vector<128x128xf32> -> vector<128x128xf32>
    %43 = arith.truncf %42 : vector<128x128xf32> to vector<128x128xbf16>
    %cst_27 = arith.constant dense<0.000000e+00> : vector<128x128xf32>
    %44 = tpu.matmul %1, %43, %cst_27 {dimension_numbers = #tpu.dot_dimension_numbers<[1], [0], [0], [1], [0, 0, 1, 1], [], []>} : vector<128x128xbf16>, vector<128x128xbf16>, vector<128x128xf32> -> vector<128x128xf32>
    %c0_28 = arith.constant 0 : index
    %c0_29 = arith.constant 0 : index
    %45 = vector.load %arg8[%c0_28, %c0_29] : memref<1x128xf32, #tpu.memory_space<vmem>>, vector<1x128xf32>
    %46 = vector.broadcast %45 : vector<1x128xf32> to vector<128x128xf32>
    %47 = arith.addf %44, %46 : vector<128x128xf32>
    %48 = arith.mulf %47, %47 : vector<128x128xf32>
    %cst_30 = arith.constant dense<0.000000e+00> : vector<128xf32>
    %49 = vector.multi_reduction <add>, %48, %cst_30 [1] : vector<128x128xf32> to vector<128xf32>
    %50 = vector.shape_cast %49 : vector<128xf32> to vector<128x1xf32>
    %cst_31 = arith.constant 1.000000e-24 : f32
    %51 = vector.broadcast %cst_31 : f32 to vector<128x1xf32>
    %52 = arith.maximumf %50, %51 : vector<128x1xf32>
    %53 = math.rsqrt %52 : vector<128x1xf32>
    %54 = vector.broadcast %53 : vector<128x1xf32> to vector<128x128xf32>
    %55 = arith.mulf %47, %54 : vector<128x128xf32>
    %cst_32 = arith.constant 0.000000e+00 : f32
    %56 = vector.broadcast %cst_32 : f32 to vector<128x128xf32>
    %57 = arith.maximumf %55, %56 : vector<128x128xf32>
    %58 = arith.truncf %57 : vector<128x128xf32> to vector<128x128xbf16>
    %cst_33 = arith.constant dense<0.000000e+00> : vector<16x128xf32>
    %59 = tpu.matmul %4, %22, %cst_33 {dimension_numbers = #tpu.dot_dimension_numbers<[1], [0], [0], [1], [0, 0, 1, 1], [], []>} : vector<16x128xbf16>, vector<128x128xbf16>, vector<16x128xf32> -> vector<16x128xf32>
    %cst_34 = arith.constant dense<0.000000e+00> : vector<16x128xf32>
    %60 = tpu.matmul %4, %40, %cst_34 {dimension_numbers = #tpu.dot_dimension_numbers<[1], [0], [0], [1], [0, 0, 1, 1], [], []>} : vector<16x128xbf16>, vector<128x128xbf16>, vector<16x128xf32> -> vector<16x128xf32>
    %cst_35 = arith.constant dense<0.000000e+00> : vector<16x128xf32>
    %61 = tpu.matmul %4, %58, %cst_35 {dimension_numbers = #tpu.dot_dimension_numbers<[1], [0], [0], [1], [0, 0, 1, 1], [], []>} : vector<16x128xbf16>, vector<128x128xbf16>, vector<16x128xf32> -> vector<16x128xf32>
    %62 = arith.truncf %59 : vector<16x128xf32> to vector<16x128xbf16>
    %c0_36 = arith.constant 0 : index
    %c0_37 = arith.constant 0 : index
    %63 = vector.load %arg9[%c0_36, %c0_37] : memref<128x128xbf16, #tpu.memory_space<vmem>>, vector<128x128xbf16>
    %cst_38 = arith.constant dense<0.000000e+00> : vector<16x128xf32>
    %64 = tpu.matmul %62, %63, %cst_38 {dimension_numbers = #tpu.dot_dimension_numbers<[1], [0], [0], [1], [0, 0, 1, 1], [], []>} : vector<16x128xbf16>, vector<128x128xbf16>, vector<16x128xf32> -> vector<16x128xf32>
    %65 = arith.truncf %60 : vector<16x128xf32> to vector<16x128xbf16>
    %c0_39 = arith.constant 0 : index
    %c0_40 = arith.constant 0 : index
    %66 = vector.load %arg10[%c0_39, %c0_40] : memref<128x128xbf16, #tpu.memory_space<vmem>>, vector<128x128xbf16>
    %cst_41 = arith.constant dense<0.000000e+00> : vector<16x128xf32>
    %67 = tpu.matmul %65, %66, %cst_41 {dimension_numbers = #tpu.dot_dimension_numbers<[1], [0], [0], [1], [0, 0, 1, 1], [], []>} : vector<16x128xbf16>, vector<128x128xbf16>, vector<16x128xf32> -> vector<16x128xf32>
    %68 = arith.addf %64, %67 : vector<16x128xf32>
    %69 = arith.truncf %61 : vector<16x128xf32> to vector<16x128xbf16>
    %c0_42 = arith.constant 0 : index
    %c0_43 = arith.constant 0 : index
    %70 = vector.load %arg11[%c0_42, %c0_43] : memref<128x128xbf16, #tpu.memory_space<vmem>>, vector<128x128xbf16>
    %cst_44 = arith.constant dense<0.000000e+00> : vector<16x128xf32>
    %71 = tpu.matmul %69, %70, %cst_44 {dimension_numbers = #tpu.dot_dimension_numbers<[1], [0], [0], [1], [0, 0, 1, 1], [], []>} : vector<16x128xbf16>, vector<128x128xbf16>, vector<16x128xf32> -> vector<16x128xf32>
    %72 = arith.addf %68, %71 : vector<16x128xf32>
    %c0_45 = arith.constant 0 : index
    %c0_46 = arith.constant 0 : index
    %73 = vector.load %arg12[%c0_45, %c0_46] : memref<1x128xf32, #tpu.memory_space<vmem>>, vector<1x128xf32>
    %74 = vector.broadcast %73 : vector<1x128xf32> to vector<16x128xf32>
    %75 = arith.addf %72, %74 : vector<16x128xf32>
    %c0_47 = arith.constant 0 : index
    %c0_48 = arith.constant 0 : index
    %76 = vector.load %arg14[%c0_47, %c0_48] : memref<16x128xf32, #tpu.memory_space<vmem>>, vector<16x128xf32>
    tpu.vector_store %arg14[%c0_47, %c0_48], %75 {strides = array<i32>} : memref<16x128xf32, #tpu.memory_space<vmem>>, vector<16x128xf32>,
    return
  }
  func.func @transform_0(%arg0: i32) -> (i32, i32, i32) {
    %c0_i32 = arith.constant 0 : i32
    %c0_i32_0 = arith.constant 0 : i32
    %c0_i32_1 = arith.constant 0 : i32
    return %arg0, %c0_i32, %c0_i32_0 : i32, i32, i32
  }
  func.func @transform_1(%arg0: i32) -> (i32, i32, i32) {
    %c0_i32 = arith.constant 0 : i32
    %c0_i32_0 = arith.constant 0 : i32
    %c0_i32_1 = arith.constant 0 : i32
    return %arg0, %c0_i32, %c0_i32_0 : i32, i32, i32
  }
  func.func @transform_2(%arg0: i32) -> (i32, i32) {
    %c0_i32 = arith.constant 0 : i32
    %c0_i32_0 = arith.constant 0 : i32
    %c0_i32_1 = arith.constant 0 : i32
    return %c0_i32, %c0_i32_0 : i32, i32
  }
  func.func @transform_3(%arg0: i32) -> (i32, i32) {
    %c0_i32 = arith.constant 0 : i32
    %c0_i32_0 = arith.constant 0 : i32
    %c0_i32_1 = arith.constant 0 : i32
    return %c0_i32, %c0_i32_0 : i32, i32
  }
  func.func @transform_4(%arg0: i32) -> (i32, i32) {
    %c0_i32 = arith.constant 0 : i32
    %c0_i32_0 = arith.constant 0 : i32
    %c0_i32_1 = arith.constant 0 : i32
    return %c0_i32, %c0_i32_0 : i32, i32
  }
  func.func @transform_5(%arg0: i32) -> (i32, i32) {
    %c0_i32 = arith.constant 0 : i32
    %c0_i32_0 = arith.constant 0 : i32
    %c0_i32_1 = arith.constant 0 : i32
    return %c0_i32, %c0_i32_0 : i32, i32
  }
  func.func @transform_6(%arg0: i32) -> (i32, i32) {
    %c0_i32 = arith.constant 0 : i32
    %c0_i32_0 = arith.constant 0 : i32
    %c0_i32_1 = arith.constant 0 : i32
    return %c0_i32, %c0_i32_0 : i32, i32
  }
  func.func @transform_7(%arg0: i32) -> (i32, i32) {
    %c0_i32 = arith.constant 0 : i32
    %c0_i32_0 = arith.constant 0 : i32
    %c0_i32_1 = arith.constant 0 : i32
    return %c0_i32, %c0_i32_0 : i32, i32
  }
  func.func @transform_8(%arg0: i32) -> (i32, i32) {
    %c0_i32 = arith.constant 0 : i32
    %c0_i32_0 = arith.constant 0 : i32
    %c0_i32_1 = arith.constant 0 : i32
    return %c0_i32, %c0_i32_0 : i32, i32
  }
  func.func @transform_9(%arg0: i32) -> (i32, i32) {
    %c0_i32 = arith.constant 0 : i32
    %c0_i32_0 = arith.constant 0 : i32
    %c0_i32_1 = arith.constant 0 : i32
    return %c0_i32, %c0_i32_0 : i32, i32
  }
  func.func @transform_10(%arg0: i32) -> (i32, i32) {
    %c0_i32 = arith.constant 0 : i32
    %c0_i32_0 = arith.constant 0 : i32
    %c0_i32_1 = arith.constant 0 : i32
    return %c0_i32, %c0_i32_0 : i32, i32
  }
  func.func @transform_11(%arg0: i32) -> (i32, i32) {
    %c0_i32 = arith.constant 0 : i32
    %c0_i32_0 = arith.constant 0 : i32
    %c0_i32_1 = arith.constant 0 : i32
    return %c0_i32, %c0_i32_0 : i32, i32
  }
  func.func @transform_12(%arg0: i32) -> (i32, i32) {
    %c0_i32 = arith.constant 0 : i32
    %c0_i32_0 = arith.constant 0 : i32
    %c0_i32_1 = arith.constant 0 : i32
    return %c0_i32, %c0_i32_0 : i32, i32
  }
  func.func @transform_13(%arg0: i32) -> (i32, i32) {
    %c0_i32 = arith.constant 0 : i32
    %c0_i32_0 = arith.constant 0 : i32
    return %arg0, %c0_i32 : i32, i32
  }
}

</mosaic_0001>

<bundles_post_ra>
// kernel: tpu_custom_call.1
= control target key start
LH: loop header
LB: loop body
LE: loop exit
PB: predicated region body
PF: predicated region fallthrough
CT: control target
= control target key end

     0   :  { %s4144_s0 = inlined_call_operand.vmem [shape: bf16[2,128,128], index: 0, kind: input, shape index: {}]   ;;  %s4145_s1 = inlined_call_operand.vmem [shape: bf16[2,128,16], index: 1, kind: input, shape index: {}]   ;;  %s4146_s2 = inlined_call_operand.vmem [shape: bf16[16,128], index: 2, kind: input, shape index: {}]   ;;  %s4147_s3 = inlined_call_operand.vmem [shape: f32[1,128], index: 3, kind: input, shape index: {}]   ;;  %s4148_s4 = inlined_call_operand.hbm [shape: bf16[128,128], index: 4, kind: input, shape index: {}]   ;;  %s4149_s5 = inlined_call_operand.vmem [shape: f32[1,128], index: 5, kind: input, shape index: {}]   ;;  %s4150_s6 = inlined_call_operand.hbm [shape: bf16[128,128], index: 6, kind: input, shape index: {}]   ;;  %s4151_s7 = inlined_call_operand.vmem [shape: f32[1,128], index: 7, kind: input, shape index: {}]   ;;  %s4152_s8 = inlined_call_operand.hbm [shape: bf16[128,128], index: 8, kind: input, shape index: {}]   ;;  %s4153_s9 = inlined_call_operand.hbm [shape: bf16[128,128], index: 9, kind: input, shape index: {}]   ;;  %s4154_s10 = inlined_call_operand.hbm [shape: bf16[128,128], index: 10, kind: input, shape index: {}]   ;;  %s4155_s11 = inlined_call_operand.vmem [shape: f32[1,128], index: 11, kind: input, shape index: {}]   ;;  %s4156_s12 = inlined_call_operand.vmem [shape: bf16[16,128], index: 12, kind: input, shape index: {}]   ;;  %s4157_s13 = inlined_call_operand.hbm [shape: f32[32,128], index: 13, kind: output, shape index: {}]  }
   0x1   :  { %4164 = sst [smem:[#allocation21_spill]] %s4150_s6 }
   0x2   :  { %18 = vsyncpa [#allocation3], 0 }
   0x3   :  { %19 = vsyncpa [#allocation6], 0 }
   0x4   :  { %20 = vsyncpa [#allocation9], 0 }
   0x5   :  { %21 = vsyncpa [#allocation4], 0 }
   0x6   :  { %23 = vsyncpa [#allocation4 + $0x1], 0  ;;  %s3483_s25 = smov 0   ;;  %s3485_s26 = smov 0  }
   0x7   :  { %s3487_s27 = smov 0   ;;  %s3489_s28 = smov 0  }
   0x8 LB: > { %4165 = sst [smem:[#allocation16_spill]] %s3387_s25  ;;  %s3504_s29 = sadd.s32 4294967295, %s3399_s28   ;;  %s3399_s28 = sphi %s3489_s28, %s4184_s28   ;;  %s3395_s27 = sphi %s3487_s27, %s4186_s27   ;;  %s3391_s26 = sphi %s3485_s26, %s4188_s26   ;;  %s3387_s25 = sphi %s3483_s25, %s4187_s25  }
   0x9   : > { %4166 = sst [smem:[#allocation17_spill]] %s3395_s27  ;;  %s2402_s30 = sadd.s32 4294967294, %s3399_s28  }
   0xa   : > { %s3508_s14 = sadd.s32 1, %s3399_s28   ;;  %s319_s15 = sadd.s32 1, %s3395_s27 }
   0xb   : > { %4167 = sst [smem:[#allocation18_spill]] %s3508_s14  ;;  %s316_s16 = ssub.s32 %s3399_s28, %s3508_s14 }
   0xc   : > { %p329_p0 = scmp.ne.s32.totalorder %s3395_s27, %s3391_s26  ;;  %p317_p1 = scmp.eq.s32.totalorder %s316_s16, 0 }
   0xd   : > { %p330_p2 = scmp.eq.s32.totalorder %s3504_s29, 1  ;;  %p335_p3 = scmp.ne.s32.totalorder %s3391_s26, %s3387_s25 }
   0xe   : > { %p336_p4 = scmp.eq.s32.totalorder %s2402_s30, 1  ;;  %p2403_p7 = scmp.ge.s32.totalorder %s3399_s28, 1 }
   0xf   : > { %s3519_s17 = scalar_select %p317_p1, %s3395_s27, %s319_s15  }
  0x10   : > { %p3521_p5 = por %p330_p2, %p329_p0  ;;  %p3525_p6 = por %p336_p4, %p335_p3 }
  0x11   : > { %4168 = sst [smem:[#allocation19_spill]] %s3519_s17  ;;  %p343_p8 = scmp.lt.s32.totalorder %s3399_s28, 3 }
  0x12   : > { %s4170_s19 = scalar_select %p3525_p6, 1, 0 }
  0x13   : > { %p4163_p9 = scmp.eq.s32.totalorder %s3504_s29, 0  ;;  %p3532_p10 = pnand %p2403_p7, %p343_p8 }
  0x14   : > { %4171 = sst [smem:[#allocation20_spill]] %s4170_s19  ;;  %s3401_s21 = smov [#allocation5]  }
  0x15   : > { %p2962_p11 = pneg %p3532_p10  ;;  %s377_s22 = sshll.u32 %s3401_s21, 4  ;;  %s378_s22 = int_to_ptr.vmem [resolvable:$true] %s377_s22 }
  0x16   : > { %s3402_s24 = smov [#allocation8]   ;;  %s3403_s15 = smov [#allocation2]  }
  0x17   : > { %p3540_p12 = pnand %p4163_p9, %p2962_p11  ;;  %s406_s30 = sshll.u32 %s3402_s24, 4  ;;  %s407_s30 = int_to_ptr.vmem [resolvable:$true] %s406_s30 }
  0x18   : > { %s361_s16 = sshll.u32 %s3403_s15, 4  ;;  %s3208_s27 = scalar_lea.vmem %s378_s22, 1024  ;;  %s362_s16 = int_to_ptr.vmem [resolvable:$true] %s361_s16 }
  0x19   : > { %p3546_p13 = pneg %p3540_p12  ;;  %p3209_p0 = scmp.ne.s32.totalorder %s378_s22, %s3208_s27 }
  0x1a   : > { %p3216_p3 = scmp.lt.s32.totalorder %s378_s22, %s378_s22  ;;  %p3217_p4 = scmp.lt.s32.totalorder %s3208_s27, %s3208_s27 }
  0x1b   : > { %p3211_p1 = pnand %p3209_p0, %p3546_p13 }
  0x1c   : > { %p3218_p7 = por %p3217_p4, %p3216_p3 }
  0x1d   : > { %p3212_p2 = pneg %p3211_p1 }
  0x1f   : > { %p3219_p8 = pnand %p3218_p7, %p3212_p2 }
  0x21   : > { %3222 = shalt.err (!%p3219_p8)
}
  0x22   : > { %s3404_s21 = smov 64   ;;  %s3405_s24 = smov 4  }
  0x23   : > { %s4175_s6 = sld [smem:[#allocation21_spill]]  ;;  %s3234_s19 = scalar_lea.vmem %s407_s30, 1024 }
  0x24   : > { %p3235_p11 = scmp.ne.s32.totalorder %s407_s30, %s3234_s19  ;;  %p3242_p3 = scmp.lt.s32.totalorder %s407_s30, %s407_s30 }
  0x25   : > { %p3243_p2 = scmp.lt.s32.totalorder %s3234_s19, %s3234_s19 }
  0x26   : > { %p3237_p0 = pnand %p3235_p11, %p3546_p13 }
  0x27   : > { %p3244_p4 = por %p3243_p2, %p3242_p3 }
  0x28   : > { %p3238_p1 = pneg %p3237_p0 }
  0x29   : > { %2968 = dma.hbm_to_vmem [thread:$0]  (!%p3540_p12), %s4175_s6, 1024, %s378_s22, [#allocation6], %s3404_s21, %s3404_s21, %s3405_s24  }
  0x2a   : > { %p3245_p7 = pnand %p3244_p4, %p3238_p1 }
  0x2c   : > { %3248 = shalt.err (!%p3245_p7)
}
  0x2d   : > { %2974 = dma.hbm_to_vmem [thread:$0]  (!%p3540_p12), %s4153_s9, 1024, %s407_s30, [#allocation9], %s3404_s21, %s3404_s21, %s3405_s24  }
  0x2e   : > { %s3260_s14 = scalar_lea.vmem %s362_s16, 1024  ;;  %p3268_p9 = scmp.lt.s32.totalorder %s362_s16, %s362_s16 }
  0x2f   : > { %p3261_p8 = scmp.ne.s32.totalorder %s362_s16, %s3260_s14  ;;  %p3269_p3 = scmp.lt.s32.totalorder %s3260_s14, %s3260_s14 }
  0x31   : > { %p3263_p11 = pnand %p3261_p8, %p3546_p13  ;;  %p3270_p1 = por %p3269_p3, %p3268_p9 }
  0x33   : > { %p3264_p0 = pneg %p3263_p11 }
  0x35   : > { %p3271_p2 = pnand %p3270_p1, %p3264_p0 }
  0x37   : > { %3274 = shalt.err (!%p3271_p2)
}
  0x38   : > { %2965 = dma.hbm_to_vmem [thread:$0]  (!%p3540_p12), %s4148_s4, 1024, %s362_s16, [#allocation3], %s3404_s21, %s3404_s21, %s3405_s24  }
  0x39   : > { %s3406_s22 = smov [#allocation7]   ;;  %s3407_s15 = smov [#allocation10]  }
  0x3a   : > { %s393_s30 = sshll.u32 %s3406_s22, 4  ;;  %s419_s27 = sshll.u32 %s3407_s15, 4  ;;  %s394_s30 = int_to_ptr.vmem [resolvable:$true] %s393_s30  ;;  %s420_s27 = int_to_ptr.vmem [resolvable:$true] %s419_s27 }
  0x3b   : > { %s3286_s6 = scalar_lea.vmem %s394_s30, 1024  ;;  %p3294_p8 = scmp.lt.s32.totalorder %s394_s30, %s394_s30 }
  0x3c   : > { %p3287_p4 = scmp.ne.s32.totalorder %s394_s30, %s3286_s6  ;;  %p3295_p11 = scmp.lt.s32.totalorder %s3286_s6, %s3286_s6 }
  0x3e   : > { %p3289_p9 = pnand %p3287_p4, %p3546_p13  ;;  %p3296_p0 = por %p3295_p11, %p3294_p8 }
  0x40   : > { %p3290_p7 = pneg %p3289_p9 }
  0x42   : > { %p3297_p3 = pnand %p3296_p0, %p3290_p7 }
  0x44   : > { %3300 = shalt.err (!%p3297_p3)
}
  0x45   : > { %2971 = dma.hbm_to_vmem [thread:$0]  (!%p3540_p12), %s4152_s8, 1024, %s394_s30, [#allocation6], %s3404_s21, %s3404_s21, %s3405_s24  }
  0x46   : > { %s3312_s19 = scalar_lea.vmem %s420_s27, 1024  ;;  %p3320_p9 = scmp.lt.s32.totalorder %s420_s27, %s420_s27 }
  0x47   : > { %p3313_p1 = scmp.ne.s32.totalorder %s420_s27, %s3312_s19  ;;  %p3321_p8 = scmp.lt.s32.totalorder %s3312_s19, %s3312_s19 }
  0x49   : > { %p3315_p2 = pnand %p3313_p1, %p3546_p13  ;;  %p3322_p7 = por %p3321_p8, %p3320_p9 }
  0x4b   : > { %p3316_p4 = pneg %p3315_p2 }
  0x4d   : > { %p3323_p11 = pnand %p3322_p7, %p3316_p4 }
  0x4f   : > { %3326 = shalt.err (!%p3323_p11)
}
  0x50   : > { %2977 = dma.hbm_to_vmem [thread:$0]  (!%p3540_p12), %s4154_s10, 1024, %s420_s27, [#allocation9], %s3404_s21, %s3404_s21, %s3405_s24  }
  0x51   : > { %457 = sbr.rel (%p3532_p10) target bundleno = 2431 (0x97f), region = 72  ;;  %p4176_p13 = scmp.eq.s32.totalorder (!%p3532_p10), %s3504_s29, 0 }
  0x56   : > { %3370 = dma.done.wait (%p4176_p13), [#allocation3], 1024   ;;  %p4177_p0 = pmov %p4176_p13 }
  0x58   : > { %3372 = vsyncadd (%p4177_p0), [#allocation3], 4294966272  ;;  %p4178_p3 = pmov %p4177_p0 }
  0x59   : > { %p4179_p1 = pmov %p4177_p0 }
  0x5a   : > { %3374 = dma.done.wait (%p4178_p3), [#allocation6], 2048  }
  0x5b   : > { %3376 = vsyncadd (%p4179_p1), [#allocation6], 4294965248  ;;  %p4180_p2 = pmov %p4177_p0 }
  0x5c   : > { %p4181_p12 = pmov %p4177_p0 }
  0x5d   : > { %3378 = dma.done.wait (%p4180_p2), [#allocation9], 2048  }
  0x5e   : > { %3380 = vsyncadd (%p4181_p12), [#allocation9], 4294965248  ;;  %p522_p10 = scmp.lt.s32.totalorder %s3504_s29, 1  ;;  %v3036_v0 = vld [vmem:[%s4146_s2] sm:$0xff]   ;;  %vm616_vm0 = vcmask 130048   ;;  %v3053_v41 = vld [vmem:[#allocation2 + $0x38] sm:$0xff]  }
  0x5f   : > { %2642 = vmatprep.subr.bf16.mxu0 %v3036_v0  ;;  %v3671_v42 = vld [vmem:[%s4147_s3] ss:$0 sm:$0xff]  ;;  %v3054_v62 = vld [vmem:[#allocation2 + $0x30] sm:$0xff]   ;;  %vm3409_vm1 = vmmov 0   ;;  %s2498_s14 = sshll.u32 %s3504_s29, 8 }
  0x60   : > { %s523_s17 = scalar_select %p522_p10, %s3504_s29, 1  ;;  %2643 = vmatpush3.bf16.msra.mxu0 %v3036_v0 }
  0x61   : > { %2692 = vmatprep.subr.bf16.mxu0 %v3053_v41  ;;  %s4102_s25 = scalar_lea.hbm %s4157_s13, %s2498_s14  ;;  %s3410_s29 = smov [#allocation11]  }
  0x62   : > { %s2496_s20 = sshll.u32 %s523_s17, 6  ;;  %s3331_s23 = sshll.u32 %s3410_s29, 4  ;;  %s3332_s23 = int_to_ptr.vmem [resolvable:$false] %s3331_s23 }
  0x63   : > { %s531_s24 = scalar_lea.vmem %s4145_s1, %s2496_s20  ;;  %s3628_s16 = scalar_lea.vmem %s4144_s0, %s2496_s20 }
  0x64   : > { %v3037_v1 = vld [vmem:[%s531_s24] sm:$0xff]   ;;  %v3038_v2 = vld [vmem:[%s531_s24 + $0x8] sm:$0xff]   ;;  %v3039_v3 = vld [vmem:[%s531_s24 + $0x10] sm:$0xff]   ;;  %s3333_s21 = scalar_lea.vmem %s3332_s23, 512 }
  0x65   : > { %2644 = vmatprep.mubr.msk.bf16.mxu0 %vm616_vm0, %v3037_v1  ;;  %v3040_v4 = vld [vmem:[%s531_s24 + $0x18] sm:$0xff]   ;;  %v3041_v5 = vld [vmem:[%s531_s24 + $0x20] sm:$0xff]   ;;  %v3042_v6 = vld [vmem:[%s531_s24 + $0x28] sm:$0xff]  }
  0x66   : > { %2645 = vmatmul.mubr.msk.bf16.vlgmr.msra.gmra.mxu0 %vm616_vm0, %v3038_v2  ;;  %v3043_v7 = vld [vmem:[%s531_s24 + $0x30] sm:$0xff]   ;;  %v3044_v8 = vld [vmem:[%s531_s24 + $0x38] sm:$0xff]   ;;  %v3636_v9 = vld [vmem:[%s3628_s16] sm:$0xff]   ;;  %s519_s24 = sand.u32 1, %s3391_s26  }
  0x67   : > { %2648 = vmatprep.mubr.msk.bf16.mxu0 %vm616_vm0, %v3039_v3  ;;  %2676 = vmatprep.mubr.bf16.mxu1 %v3636_v9  ;;  %v3640_v34 = vld [vmem:[%s3628_s16 + $0x8] sm:$0xff]   ;;  %v3643_v35 = vld [vmem:[%s3628_s16 + $0x10] sm:$0xff]   ;;  %v3648_v36 = vld [vmem:[%s3628_s16 + $0x18] sm:$0xff]   ;;  %s2416_s22 = sshll.u32 %s519_s24, 4  ;;  %s4104_s17 = scalar_lea.sflag [#allocation4], %s519_s24 }
  0x68   : > { %v3651_v37 = vld [vmem:[%s3628_s16 + $0x20] sm:$0xff]   ;;  %v3656_v38 = vld [vmem:[%s3628_s16 + $0x28] sm:$0xff]   ;;  %v3659_v39 = vld [vmem:[%s3628_s16 + $0x30] sm:$0xff]   ;;  %2693 = vmatpush3.bf16.msra.mxu0 %v3053_v41  ;;  %s521_s27 = scalar_lea.vmem [#allocation11], %s2416_s22 }
  0x69   : > { %v3664_v40 = vld [vmem:[%s3628_s16 + $0x38] sm:$0xff]   ;;  %2694 = vmatprep.subr.bf16.mxu0 %v3054_v62  ;;  %v3060_v41 = vld [vmem:[#allocation2] sm:$0xff]  }
  0x6c   : > { %2695 = vmatpush3.bf16.msra.mxu0 %v3054_v62 }
  0x6e   : > { %2649 = vmatmul.mubr.msk.bf16.gmra.mxu0 %vm616_vm0, %v3040_v4 }
  0x6f   : > { %2652 = vmatprep.mubr.msk.bf16.mxu0 %vm616_vm0, %v3041_v5  ;;  %v3055_v5 = vld [vmem:[#allocation2 + $0x28] sm:$0xff]  }
  0x70   : > { %2696 = vmatprep.subr.bf16.mxu0 %v3055_v5 }
  0x71   : > { %2697 = vmatpush3.bf16.msra.mxu0 %v3055_v5 }
  0x76   : > { %2653 = vmatmul.mubr.msk.bf16.gmra.mxu0 %vm616_vm0, %v3042_v6 }
  0x77   : > { %2656 = vmatprep.mubr.msk.bf16.mxu0 %vm616_vm0, %v3043_v7 }
  0x7e   : > { %2657 = vmatmul.mubr.msk.bf16.gmra.mxu0 %vm616_vm0, %v3044_v8 }
 0x126   : > { %v2646_v10 = vpop.f32.mrf.mxu0 }
 0x128   : > { %v675_v11 = vpop.f32.mrf.mxu0 }
 0x12a   : > { %v2647_v12 = vpop.f32.mrf.mxu0 }
 0x12b   : > { %v739_v32 = vpack.c.bf16 %v2647_v12, %v2646_v10 }
 0x12c   : > { %v678_v13 = vpop.f32.mrf.mxu0 }
 0x12d   : > { %v738_v33 = vpack.c.bf16 %v678_v13, %v675_v11  ;;  %v3056_v13 = vld [vmem:[#allocation2 + $0x20] sm:$0xff]  }
 0x12e   : > { %v2650_v14 = vpop.f32.mrf.mxu0  ;;  %2698 = vmatprep.subr.bf16.mxu0 %v3056_v13 }
 0x12f   : > { %2699 = vmatpush3.bf16.msra.mxu0 %v3056_v13 }
 0x130   : > { %v691_v15 = vpop.f32.mrf.mxu0 }
 0x132   : > { %v2651_v16 = vpop.f32.mrf.mxu0 }
 0x133   : > { %v741_v30 = vpack.c.bf16 %v2651_v16, %v2650_v14 }
 0x134   : > { %v694_v17 = vpop.f32.mrf.mxu0 }
 0x135   : > { %v740_v31 = vpack.c.bf16 %v694_v17, %v691_v15 }
 0x136   : > { %v2654_v18 = vpop.f32.mrf.mxu0 }
 0x138   : > { %v707_v19 = vpop.f32.mrf.mxu0 }
 0x13a   : > { %v2655_v20 = vpop.f32.mrf.mxu0 }
 0x13b   : > { %v743_v28 = vpack.c.bf16 %v2655_v20, %v2654_v18  ;;  %v3057_v20 = vld [vmem:[#allocation2 + $0x18] sm:$0xff]  }
 0x13c   : > { %v710_v21 = vpop.f32.mrf.mxu0  ;;  %2700 = vmatprep.subr.bf16.mxu0 %v3057_v20 }
 0x13d   : > { %v742_v29 = vpack.c.bf16 %v710_v21, %v707_v19  ;;  %2701 = vmatpush3.bf16.msra.mxu0 %v3057_v20 }
 0x13e   : > { %v2658_v22 = vpop.f32.mrf.mxu0 }
 0x140   : > { %v723_v23 = vpop.f32.mrf.mxu0 }
 0x142   : > { %v2659_v24 = vpop.f32.mrf.mxu0 }
 0x143   : > { %v745_v25 = vpack.c.bf16 %v2659_v24, %v2658_v22 }
 0x144   : > { %v726_v26 = vpop.f32.mrf.mxu0 }
 0x145   : > { %v744_v27 = vpack.c.bf16 %v726_v26, %v723_v23  ;;  %2660 = vmatprep.subr.bf16.mxu1 %v745_v25 }
 0x146   : > { %2661 = vmatpush3.bf16.msra.mxu1 %v745_v25 }
 0x147   : > { %2662 = vmatprep.subr.bf16.mxu1 %v744_v27 }
 0x14a   : > { %2663 = vmatpush3.bf16.msra.mxu1 %v744_v27 }
 0x14b   : > { %2664 = vmatprep.subr.bf16.mxu1 %v743_v28 }
 0x14e   : > { %2665 = vmatpush3.bf16.msra.mxu1 %v743_v28  ;;  %v3058_v28 = vld [vmem:[#allocation2 + $0x10] sm:$0xff]  }
 0x14f   : > { %2666 = vmatprep.subr.bf16.mxu1 %v742_v29  ;;  %2702 = vmatprep.subr.bf16.mxu0 %v3058_v28 }
 0x150   : > { %2703 = vmatpush3.bf16.msra.mxu0 %v3058_v28 }
 0x152   : > { %2667 = vmatpush3.bf16.msra.mxu1 %v742_v29 }
 0x153   : > { %2668 = vmatprep.subr.bf16.mxu1 %v741_v30 }
 0x156   : > { %2669 = vmatpush3.bf16.msra.mxu1 %v741_v30 }
 0x157   : > { %2670 = vmatprep.subr.bf16.mxu1 %v740_v31 }
 0x15a   : > { %2671 = vmatpush3.bf16.msra.mxu1 %v740_v31 }
 0x15b   : > { %2672 = vmatprep.subr.bf16.mxu1 %v739_v32 }
 0x15e   : > { %2673 = vmatpush3.bf16.msra.mxu1 %v739_v32  ;;  %v3059_v32 = vld [vmem:[#allocation2 + $0x8] sm:$0xff]  }
 0x15f   : > { %2674 = vmatprep.subr.bf16.mxu1 %v738_v33  ;;  %2704 = vmatprep.subr.bf16.mxu0 %v3059_v32 }
 0x160   : > { %2705 = vmatpush3.bf16.msra.mxu0 %v3059_v32 }
 0x161   : > { %2706 = vmatprep.subr.bf16.mxu0 %v3060_v41 }
 0x162   : > { %2675 = vmatpush3.bf16.msra.mxu1 %v738_v33 }
 0x164   : > { %2707 = vmatpush3.bf16.msra.mxu0 %v3060_v41 }
 0x165   : > { %2677 = vmatmul.mubr.bf16.vlgmr.msra.gmra.mxu1 %v3640_v34 }
 0x166   : > { %2680 = vmatprep.mubr.bf16.mxu1 %v3643_v35 }
 0x16d   : > { %2681 = vmatmul.mubr.bf16.gmra.mxu1 %v3648_v36 }
 0x16e   : > { %2684 = vmatprep.mubr.bf16.mxu1 %v3651_v37 }
 0x175   : > { %2685 = vmatmul.mubr.bf16.gmra.mxu1 %v3656_v38 }
 0x176   : > { %2688 = vmatprep.mubr.bf16.mxu1 %v3659_v39 }
 0x17d   : > { %2689 = vmatmul.mubr.bf16.gmra.mxu1 %v3664_v40 }
 0x17e   : > { %2740 = vmatprep.mubr.bf16.mxu1 %v3636_v9 }
 0x225   : > { %v2678_v43 = vpop.f32.mrf.mxu1 }
 0x226   : > { %v3674_v44 = vadd.f32 %v2678_v43, %v3671_v42 }
 0x227   : > { %v835_v45 = vpop.f32.mrf.mxu1 }
 0x228   : > { %v3677_v46 = vadd.f32 %v3671_v42, %v835_v45  ;;  %v900_v47 = vmul.f32 %v3674_v44, %v3674_v44 }
 0x229   : > { %v2679_v48 = vpop.f32.mrf.mxu1 }
 0x22a   : > { %v3682_v49 = vadd.f32 %v2679_v48, %v3671_v42  ;;  %918 = vadd.xlane.f32.xlu1 %v900_v47  ;;  %v898_v50 = vmul.f32 %v3677_v46, %v3677_v46 }
 0x22b   : > { %v838_v51 = vpop.f32.mrf.mxu1 }
 0x22c   : > { %v3687_v52 = vadd.f32 %v3671_v42, %v838_v51  ;;  %914 = vadd.xlane.f32.xlu0 %v898_v50  ;;  %v901_v53 = vmul.f32 %v3682_v49, %v3682_v49 }
 0x22d   : > { %v2682_v54 = vpop.f32.mrf.mxu1 }
 0x22e   : > { %920 = vadd.xlane.f32.xlu1 %v901_v53  ;;  %v899_v55 = vmul.f32 %v3687_v52, %v3687_v52  ;;  %v3697_v59 = vadd.f32 %v2682_v54, %v3671_v42 }
 0x22f   : > { %v851_v56 = vpop.f32.mrf.mxu1 }
 0x230   : > { %v3694_v57 = vadd.f32 %v3671_v42, %v851_v56  ;;  %916 = vadd.xlane.f32.xlu0 %v899_v55  ;;  %v904_v3 = vmul.f32 %v3697_v59, %v3697_v59 }
 0x231   : > { %v2683_v58 = vpop.f32.mrf.mxu1 }
 0x232   : > { %v902_v60 = vmul.f32 %v3694_v57, %v3694_v57  ;;  %v3705_v1 = vadd.f32 %v2683_v58, %v3671_v42 }
 0x233   : > { %v854_v61 = vpop.f32.mrf.mxu1 }
 0x234   : > { %v3702_v63 = vadd.f32 %v3671_v42, %v854_v61  ;;  %922 = vadd.xlane.f32.xlu0 %v902_v60  ;;  %v905_v10 = vmul.f32 %v3705_v1, %v3705_v1 }
 0x235   : > { %v2686_v0 = vpop.f32.mrf.mxu1 }
 0x236   : > { %v903_v2 = vmul.f32 %v3702_v63, %v3702_v63  ;;  %v3715_v8 = vadd.f32 %v2686_v0, %v3671_v42 }
 0x237   : > { %v867_v4 = vpop.f32.mrf.mxu1 }
 0x238   : > { %v3712_v6 = vadd.f32 %v3671_v42, %v867_v4  ;;  %924 = vadd.xlane.f32.xlu1 %v903_v2  ;;  %926 = vadd.xlane.f32.xlu0 %v904_v3  ;;  %v908_v18 = vmul.f32 %v3715_v8, %v3715_v8 }
 0x239   : > { %v2687_v7 = vpop.f32.mrf.mxu1 }
 0x23a   : > { %v906_v11 = vmul.f32 %v3712_v6, %v3712_v6  ;;  %v3725_v16 = vadd.f32 %v2687_v7, %v3671_v42 }
 0x23b   : > { %v870_v12 = vpop.f32.mrf.mxu1 }
 0x23c   : > { %v3722_v14 = vadd.f32 %v3671_v42, %v870_v12  ;;  %928 = vadd.xlane.f32.xlu1 %v905_v10  ;;  %930 = vadd.xlane.f32.xlu0 %v906_v11  ;;  %v909_v24 = vmul.f32 %v3725_v16, %v3725_v16 }
 0x23d   : > { %v2690_v15 = vpop.f32.mrf.mxu1 }
 0x23e   : > { %v907_v17 = vmul.f32 %v3722_v14, %v3722_v14  ;;  %v3735_v23 = vadd.f32 %v2690_v15, %v3671_v42 }
 0x23f   : > { %v883_v19 = vpop.f32.mrf.mxu1 }
 0x240   : > { %v3732_v21 = vadd.f32 %v3671_v42, %v883_v19  ;;  %932 = vadd.xlane.f32.xlu1 %v907_v17  ;;  %934 = vadd.xlane.f32.xlu0 %v908_v18  ;;  %v912_v31 = vmul.f32 %v3735_v23, %v3735_v23 }
 0x241   : > { %v2691_v22 = vpop.f32.mrf.mxu1 }
 0x242   : > { %v910_v25 = vmul.f32 %v3732_v21, %v3732_v21  ;;  %v3745_v29 = vadd.f32 %v2691_v22, %v3671_v42 }
 0x243   : > { %v886_v26 = vpop.f32.mrf.mxu1 }
 0x244   : > { %v3742_v27 = vadd.f32 %v3671_v42, %v886_v26  ;;  %936 = vadd.xlane.f32.xlu1 %v909_v24  ;;  %938 = vadd.xlane.f32.xlu0 %v910_v25  ;;  %v913_v33 = vmul.f32 %v3745_v29, %v3745_v29 }
 0x246   : > { %v911_v30 = vmul.f32 %v3742_v27, %v3742_v27 }
 0x248   : > { %940 = vadd.xlane.f32.xlu1 %v911_v30  ;;  %942 = vadd.xlane.f32.xlu0 %v912_v31 }
 0x24c   : > { %944 = vadd.xlane.f32.xlu1 %v913_v33 }
 0x2b3   : > { %v919_v42 = vpop.xlane.xlu1 %918 }
 0x2b4   : > { %v948_v43 = vmax.f32 %v919_v42, 1e-24 }
 0x2b5   : > { %v915_v45 = vpop.xlane.xlu0 %914 }
 0x2b6   : > { %v946_v47 = vmax.f32 %v915_v45, 1e-24 }
 0x2b7   : > { %v921_v48 = vpop.xlane.xlu1 %920 }
 0x2b8   : > { %3094 = vrsqrt.f32 %v946_v47  ;;  %v949_v50 = vmax.f32 %v921_v48, 1e-24 }
 0x2b9   : > { %3096 = vrsqrt.f32 %v948_v43  ;;  %v917_v51 = vpop.xlane.xlu0 %916 }
 0x2ba   : > { %3098 = vrsqrt.f32 %v949_v50  ;;  %v947_v53 = vmax.f32 %v917_v51, 1e-24 }
 0x2bc   : > { %3100 = vrsqrt.f32 %v947_v53 }
 0x2bd   : > { %v923_v54 = vpop.xlane.xlu0 %922 }
 0x2be   : > { %v950_v55 = vmax.f32 %v923_v54, 1e-24 }
 0x2c0   : > { %3102 = vrsqrt.f32 %v950_v55 }
 0x2c1   : > { %v925_v56 = vpop.xlane.xlu1 %924  ;;  %v927_v58 = vpop.xlane.xlu0 %926 }
 0x2c2   : > { %v951_v60 = vmax.f32 %v925_v56, 1e-24  ;;  %v952_v61 = vmax.f32 %v927_v58, 1e-24 }
 0x2c4   : > { %3104 = vrsqrt.f32 %v951_v60 }
 0x2c5   : > { %v3095_v62 = vpop.eup %3094  ;;  %3106 = vrsqrt.f32 %v952_v61  ;;  %v929_v0 = vpop.xlane.xlu1 %928 }
 0x2c6   : > { %v931_v2 = vpop.xlane.xlu0 %930  ;;  %v3097_v3 = vpop.eup %3096  ;;  %v953_v4 = vmax.f32 %v929_v0, 1e-24  ;;  %v978_v10 = vmul.f32 %v3095_v62, %v3677_v46 }
 0x2c7   : > { %v954_v5 = vmax.f32 %v931_v2, 1e-24  ;;  %v3099_v7 = vpop.eup %3098  ;;  %v980_v17 = vmul.f32 %v3097_v3, %v3674_v44 }
 0x2c8   : > { %3108 = vrsqrt.f32 %v953_v4  ;;  %v981_v11 = vmul.f32 %v3099_v7, %v3682_v49  ;;  %v994_v24 = vmax.f32 %v978_v10, 0.0 }
 0x2c9   : > { %v3101_v12 = vpop.eup %3100  ;;  %3110 = vrsqrt.f32 %v954_v5  ;;  %v933_v13 = vpop.xlane.xlu1 %932  ;;  %v996_v30 = vmax.f32 %v980_v17, 0.0 }
 0x2ca   : > { %v935_v15 = vpop.xlane.xlu0 %934  ;;  %v955_v18 = vmax.f32 %v933_v13, 1e-24  ;;  %v979_v20 = vmul.f32 %v3101_v12, %v3687_v52  ;;  %v997_v22 = vmax.f32 %v981_v11, 0.0 }
 0x2cb   : > { %v956_v19 = vmax.f32 %v935_v15, 1e-24 }
 0x2cc   : > { %3112 = vrsqrt.f32 %v955_v18  ;;  %v995_v25 = vmax.f32 %v979_v20, 0.0  ;;  %v3759_v33 = vpack.c.bf16 %v997_v22, %v996_v30 }
 0x2cd   : > { %v3103_v26 = vpop.eup %3102  ;;  %3114 = vrsqrt.f32 %v956_v19  ;;  %v937_v28 = vpop.xlane.xlu1 %936 }
 0x2ce   : > { %v939_v46 = vpop.xlane.xlu0 %938  ;;  %v957_v49 = vmax.f32 %v937_v28, 1e-24  ;;  %v3757_v32 = vpack.c.bf16 %v995_v25, %v994_v24  ;;  %v982_v44 = vmul.f32 %v3103_v26, %v3694_v57 }
 0x2cf   : > { %v958_v31 = vmax.f32 %v939_v46, 1e-24 }
 0x2d0   : > { %3116 = vrsqrt.f32 %v957_v49  ;;  %2708 = vmatprep.mubr.bf16.mxu0 %v3757_v32  ;;  %v998_v50 = vmax.f32 %v982_v44, 0.0 }
 0x2d1   : > { %v3105_v52 = vpop.eup %3104  ;;  %3118 = vrsqrt.f32 %v958_v31  ;;  %v941_v41 = vpop.xlane.xlu1 %940  ;;  %2709 = vmatmul.mubr.bf16.vlgmr.msra.gmra.mxu0 %v3759_v33 }
 0x2d2   : > { %v943_v42 = vpop.xlane.xlu0 %942  ;;  %v3107_v43 = vpop.eup %3106  ;;  %v959_v45 = vmax.f32 %v941_v41, 1e-24  ;;  %v983_v48 = vmul.f32 %v3105_v52, %v3702_v63 }
 0x2d3   : > { %v960_v47 = vmax.f32 %v943_v42, 1e-24  ;;  %v984_v53 = vmul.f32 %v3107_v43, %v3697_v59 }
 0x2d4   : > { %3120 = vrsqrt.f32 %v959_v45  ;;  %v999_v51 = vmax.f32 %v983_v48, 0.0 }
 0x2d5   : > { %v3109_v54 = vpop.eup %3108  ;;  %3122 = vrsqrt.f32 %v960_v47  ;;  %v945_v55 = vpop.xlane.xlu1 %944  ;;  %v1000_v61 = vmax.f32 %v984_v53, 0.0 }
 0x2d6   : > { %v3111_v57 = vpop.eup %3110  ;;  %v961_v56 = vmax.f32 %v945_v55, 1e-24  ;;  %v3766_v58 = vpack.c.bf16 %v999_v51, %v998_v50  ;;  %v985_v60 = vmul.f32 %v3109_v54, %v3705_v1 }
 0x2d7   : > { %v986_v63 = vmul.f32 %v3111_v57, %v3712_v6 }
 0x2d8   : > { %3124 = vrsqrt.f32 %v961_v56  ;;  %2712 = vmatprep.mubr.bf16.mxu0 %v3766_v58  ;;  %v1001_v62 = vmax.f32 %v985_v60, 0.0 }
 0x2d9   : > { %v3113_v0 = vpop.eup %3112  ;;  %v1002_v4 = vmax.f32 %v986_v63, 0.0 }
 0x2da   : > { %v3115_v2 = vpop.eup %3114  ;;  %v3771_v3 = vpack.c.bf16 %v1001_v62, %v1000_v61  ;;  %v987_v59 = vmul.f32 %v3113_v0, %v3722_v14  ;;  %v3061_v62 = vld [vmem:[#allocation5 + $0x38] sm:$0xff]  }
 0x2db   : > { %v988_v7 = vmul.f32 %v3115_v2, %v3715_v8  ;;  %2756 = vmatprep.subr.bf16.mxu0 %v3061_v62 }
 0x2dc   : > { %2713 = vmatmul.mubr.bf16.gmra.mxu0 %v3771_v3  ;;  %v1003_v5 = vmax.f32 %v987_v59, 0.0 }
 0x2dd   : > { %v3117_v1 = vpop.eup %3116  ;;  %v1004_v6 = vmax.f32 %v988_v7, 0.0  ;;  %2757 = vmatpush3.bf16.msra.mxu0 %v3061_v62  ;;  %v3068_v62 = vld [vmem:[#allocation5] sm:$0xff]  }
 0x2de   : > { %v3119_v10 = vpop.eup %3118  ;;  %v3776_v11 = vpack.c.bf16 %v1003_v5, %v1002_v4  ;;  %v989_v12 = vmul.f32 %v3117_v1, %v3725_v16 }
 0x2df   : > { %v990_v15 = vmul.f32 %v3119_v10, %v3732_v21 }
 0x2e0   : > { %2716 = vmatprep.mubr.bf16.mxu0 %v3776_v11  ;;  %v1005_v13 = vmax.f32 %v989_v12, 0.0 }
 0x2e1   : > { %v3121_v17 = vpop.eup %3120  ;;  %v1006_v8 = vmax.f32 %v990_v15, 0.0 }
 0x2e2   : > { %v3123_v14 = vpop.eup %3122  ;;  %v3781_v18 = vpack.c.bf16 %v1005_v13, %v1004_v6  ;;  %v991_v19 = vmul.f32 %v3121_v17, %v3742_v27 }
 0x2e3   : > { %v992_v22 = vmul.f32 %v3123_v14, %v3735_v23 }
 0x2e4   : > { %2717 = vmatmul.mubr.bf16.gmra.mxu0 %v3781_v18  ;;  %v1007_v20 = vmax.f32 %v991_v19, 0.0 }
 0x2e5   : > { %v3125_v24 = vpop.eup %3124  ;;  %v1008_v21 = vmax.f32 %v992_v22, 0.0 }
 0x2e6   : > { %v3786_v16 = vpack.c.bf16 %v1007_v20, %v1006_v8  ;;  %v993_v25 = vmul.f32 %v3125_v24, %v3745_v29  ;;  %v3062_v20 = vld [vmem:[#allocation5 + $0x30] sm:$0xff]  }
 0x2e7   : > { %2758 = vmatprep.subr.bf16.mxu0 %v3062_v20 }
 0x2e8   : > { %2720 = vmatprep.mubr.bf16.mxu0 %v3786_v16  ;;  %v1009_v26 = vmax.f32 %v993_v25, 0.0  ;;  %2759 = vmatpush3.bf16.msra.mxu0 %v3062_v20 }
 0x2ea   : > { %v3790_v28 = vpack.c.bf16 %v1009_v26, %v1008_v21 }
 0x2ec   : > { %2721 = vmatmul.mubr.bf16.gmra.mxu0 %v3790_v28 }
 0x391   : > { %v2710_v27 = vpop.f32.mrf.mxu0 }
 0x393   : > { %v1116_v46 = vpop.f32.mrf.mxu0 }
 0x395   : > { %v2711_v30 = vpop.f32.mrf.mxu0 }
 0x396   : > { %v1180_v60 = vpack.c.bf16 %v2711_v30, %v2710_v27 }
 0x397   : > { %v1119_v49 = vpop.f32.mrf.mxu0 }
 0x398   : > { %v1179_v61 = vpack.c.bf16 %v1119_v49, %v1116_v46  ;;  %v3063_v46 = vld [vmem:[#allocation5 + $0x28] sm:$0xff]  }
 0x399   : > { %2760 = vmatprep.subr.bf16.mxu0 %v3063_v46 }
 0x39a   : > { %2761 = vmatpush3.bf16.msra.mxu0 %v3063_v46 }
 0x39c   : > { %v2714_v31 = vpop.f32.mrf.mxu0 }
 0x39e   : > { %v1132_v44 = vpop.f32.mrf.mxu0 }
 0x3a0   : > { %v2715_v23 = vpop.f32.mrf.mxu0 }
 0x3a1   : > { %v1182_v57 = vpack.c.bf16 %v2715_v23, %v2714_v31 }
 0x3a2   : > { %v1135_v52 = vpop.f32.mrf.mxu0 }
 0x3a3   : > { %v1181_v56 = vpack.c.bf16 %v1135_v52, %v1132_v44 }
 0x3a4   : > { %v2718_v41 = vpop.f32.mrf.mxu0 }
 0x3a6   : > { %v1148_v42 = vpop.f32.mrf.mxu0 }
 0x3a8   : > { %v2719_v43 = vpop.f32.mrf.mxu0 }
 0x3a9   : > { %v1184_v54 = vpack.c.bf16 %v2719_v43, %v2718_v41  ;;  %v3064_v41 = vld [vmem:[#allocation5 + $0x20] sm:$0xff]  }
 0x3aa   : > { %v1151_v29 = vpop.f32.mrf.mxu0  ;;  %2762 = vmatprep.subr.bf16.mxu0 %v3064_v41 }
 0x3ab   : > { %v1183_v55 = vpack.c.bf16 %v1151_v29, %v1148_v42  ;;  %2763 = vmatpush3.bf16.msra.mxu0 %v3064_v41 }
 0x3ac   : > { %v2722_v45 = vpop.f32.mrf.mxu0 }
 0x3ae   : > { %v1164_v47 = vpop.f32.mrf.mxu0 }
 0x3b0   : > { %v2723_v48 = vpop.f32.mrf.mxu0 }
 0x3b1   : > { %v1186_v50 = vpack.c.bf16 %v2723_v48, %v2722_v45 }
 0x3b2   : > { %v1167_v51 = vpop.f32.mrf.mxu0 }
 0x3b3   : > { %v1185_v53 = vpack.c.bf16 %v1167_v51, %v1164_v47  ;;  %2724 = vmatprep.subr.bf16.mxu1 %v1186_v50 }
 0x3b4   : > { %2725 = vmatpush3.bf16.msra.mxu1 %v1186_v50  ;;  %v3065_v50 = vld [vmem:[#allocation5 + $0x18] sm:$0xff]  }
 0x3b5   : > { %2726 = vmatprep.subr.bf16.mxu1 %v1185_v53  ;;  %2764 = vmatprep.subr.bf16.mxu0 %v3065_v50 }
 0x3b6   : > { %2765 = vmatpush3.bf16.msra.mxu0 %v3065_v50 }
 0x3b8   : > { %2727 = vmatpush3.bf16.msra.mxu1 %v1185_v53 }
 0x3b9   : > { %2728 = vmatprep.subr.bf16.mxu1 %v1184_v54 }
 0x3bc   : > { %2729 = vmatpush3.bf16.msra.mxu1 %v1184_v54 }
 0x3bd   : > { %2730 = vmatprep.subr.bf16.mxu1 %v1183_v55 }
 0x3c0   : > { %2731 = vmatpush3.bf16.msra.mxu1 %v1183_v55 }
 0x3c1   : > { %2732 = vmatprep.subr.bf16.mxu1 %v1182_v57 }
 0x3c4   : > { %2733 = vmatpush3.bf16.msra.mxu1 %v1182_v57 }
 0x3c5   : > { %2734 = vmatprep.subr.bf16.mxu1 %v1181_v56 }
 0x3c8   : > { %2735 = vmatpush3.bf16.msra.mxu1 %v1181_v56  ;;  %v3066_v56 = vld [vmem:[#allocation5 + $0x10] sm:$0xff]  }
 0x3c9   : > { %2736 = vmatprep.subr.bf16.mxu1 %v1180_v60  ;;  %2766 = vmatprep.subr.bf16.mxu0 %v3066_v56 }
 0x3ca   : > { %2767 = vmatpush3.bf16.msra.mxu0 %v3066_v56 }
 0x3cc   : > { %2737 = vmatpush3.bf16.msra.mxu1 %v1180_v60 }
 0x3cd   : > { %2738 = vmatprep.subr.bf16.mxu1 %v1179_v61 }
 0x3d0   : > { %2739 = vmatpush3.bf16.msra.mxu1 %v1179_v61  ;;  %v3067_v61 = vld [vmem:[#allocation5 + $0x8] sm:$0xff]  }
 0x3d1   : > { %2768 = vmatprep.subr.bf16.mxu0 %v3067_v61 }
 0x3d2   : > { %2769 = vmatpush3.bf16.msra.mxu0 %v3067_v61 }
 0x3d3   : > { %2741 = vmatmul.mubr.bf16.vlgmr.msra.gmra.mxu1 %v3640_v34  ;;  %v3804_v34 = vld [vmem:[%s4149_s5] ss:$0 sm:$0xff]  ;;  %2770 = vmatprep.subr.bf16.mxu0 %v3068_v62 }
 0x3d4   : > { %2744 = vmatprep.mubr.bf16.mxu1 %v3643_v35 }
 0x3d6   : > { %2771 = vmatpush3.bf16.msra.mxu0 %v3068_v62 }
 0x3db   : > { %2745 = vmatmul.mubr.bf16.gmra.mxu1 %v3648_v36 }
 0x3dc   : > { %2748 = vmatprep.mubr.bf16.mxu1 %v3651_v37 }
 0x3e3   : > { %2749 = vmatmul.mubr.bf16.gmra.mxu1 %v3656_v38 }
 0x3e4   : > { %2752 = vmatprep.mubr.bf16.mxu1 %v3659_v39 }
 0x3eb   : > { %2753 = vmatmul.mubr.bf16.gmra.mxu1 %v3664_v40 }
 0x3ec   : > { %2804 = vmatprep.mubr.bf16.mxu1 %v3636_v9 }
 0x493   : > { %v2742_v63 = vpop.f32.mrf.mxu1 }
 0x494   : > { %v3810_v38 = vadd.f32 %v2742_v63, %v3804_v34  ;;  %v3408_v63 = vmov 0.0  }
 0x495   : > { %v1228_v35 = vpop.f32.mrf.mxu1  ;;  %2820 = vmatprep.subr.bf16.mxu0 %v3408_v63 }
 0x496   : > { %v3807_v36 = vadd.f32 %v3804_v34, %v1228_v35  ;;  %v1293_v4 = vmul.f32 %v3810_v38, %v3810_v38 }
 0x497   : > { %v2743_v37 = vpop.f32.mrf.mxu1 }
 0x498   : > { %v1291_v9 = vmul.f32 %v3807_v36, %v3807_v36  ;;  %v3818_v2 = vadd.f32 %v2743_v37, %v3804_v34 }
 0x499   : > { %v1231_v39 = vpop.f32.mrf.mxu1 }
 0x49a   : > { %v3815_v40 = vadd.f32 %v3804_v34, %v1231_v39  ;;  %1307 = vadd.xlane.f32.xlu0 %v1291_v9  ;;  %v1294_v12 = vmul.f32 %v3818_v2, %v3818_v2 }
 0x49b   : > { %v2746_v0 = vpop.f32.mrf.mxu1 }
 0x49c   : > { %v1292_v59 = vmul.f32 %v3815_v40, %v3815_v40  ;;  %v3828_v10 = vadd.f32 %v2746_v0, %v3804_v34 }
 0x49d   : > { %v1244_v5 = vpop.f32.mrf.mxu1 }
 0x49e   : > { %v3825_v7 = vadd.f32 %v3804_v34, %v1244_v5  ;;  %1309 = vadd.xlane.f32.xlu1 %v1292_v59  ;;  %1311 = vadd.xlane.f32.xlu0 %v1293_v4  ;;  %v1297_v8 = vmul.f32 %v3828_v10, %v3828_v10 }
 0x49f   : > { %v2747_v1 = vpop.f32.mrf.mxu1 }
 0x4a0   : > { %v1295_v6 = vmul.f32 %v3825_v7, %v3825_v7  ;;  %v3838_v14 = vadd.f32 %v2747_v1, %v3804_v34 }
 0x4a1   : > { %v1247_v13 = vpop.f32.mrf.mxu1 }
 0x4a2   : > { %v3835_v15 = vadd.f32 %v3804_v34, %v1247_v13  ;;  %1313 = vadd.xlane.f32.xlu1 %v1294_v12  ;;  %1315 = vadd.xlane.f32.xlu0 %v1295_v6  ;;  %v1298_v26 = vmul.f32 %v3838_v14, %v3838_v14 }
 0x4a3   : > { %v2750_v17 = vpop.f32.mrf.mxu1 }
 0x4a4   : > { %v1296_v19 = vmul.f32 %v3835_v15, %v3835_v15  ;;  %v3848_v21 = vadd.f32 %v2750_v17, %v3804_v34 }
 0x4a5   : > { %v1260_v22 = vpop.f32.mrf.mxu1 }
 0x4a6   : > { %v3845_v24 = vadd.f32 %v3804_v34, %v1260_v22  ;;  %1317 = vadd.xlane.f32.xlu1 %v1296_v19  ;;  %1319 = vadd.xlane.f32.xlu0 %v1297_v8  ;;  %v1301_v52 = vmul.f32 %v3848_v21, %v3848_v21 }
 0x4a7   : > { %v2751_v25 = vpop.f32.mrf.mxu1 }
 0x4a8   : > { %v1299_v27 = vmul.f32 %v3845_v24, %v3845_v24  ;;  %v3858_v44 = vadd.f32 %v2751_v25, %v3804_v34 }
 0x4a9   : > { %v1263_v30 = vpop.f32.mrf.mxu1 }
 0x4aa   : > { %v3855_v49 = vadd.f32 %v3804_v34, %v1263_v30  ;;  %1321 = vadd.xlane.f32.xlu1 %v1298_v26  ;;  %1323 = vadd.xlane.f32.xlu0 %v1299_v27  ;;  %v1302_v47 = vmul.f32 %v3858_v44, %v3858_v44 }
 0x4ab   : > { %v2754_v31 = vpop.f32.mrf.mxu1 }
 0x4ac   : > { %v1300_v23 = vmul.f32 %v3855_v49, %v3855_v49  ;;  %v3868_v45 = vadd.f32 %v2754_v31, %v3804_v34 }
 0x4ad   : > { %v1276_v42 = vpop.f32.mrf.mxu1 }
 0x4ae   : > { %v3865_v43 = vadd.f32 %v3804_v34, %v1276_v42  ;;  %1325 = vadd.xlane.f32.xlu1 %v1300_v23  ;;  %1327 = vadd.xlane.f32.xlu0 %v1301_v52  ;;  %v1305_v57 = vmul.f32 %v3868_v45, %v3868_v45 }
 0x4af   : > { %v2755_v29 = vpop.f32.mrf.mxu1 }
 0x4b0   : > { %v1303_v48 = vmul.f32 %v3865_v43, %v3865_v43  ;;  %v3878_v54 = vadd.f32 %v2755_v29, %v3804_v34 }
 0x4b1   : > { %v1279_v51 = vpop.f32.mrf.mxu1 }
 0x4b2   : > { %v3875_v53 = vadd.f32 %v3804_v34, %v1279_v51  ;;  %1329 = vadd.xlane.f32.xlu1 %v1302_v47  ;;  %1331 = vadd.xlane.f32.xlu0 %v1303_v48  ;;  %v1306_v60 = vmul.f32 %v3878_v54, %v3878_v54 }
 0x4b4   : > { %v1304_v55 = vmul.f32 %v3875_v53, %v3875_v53 }
 0x4b6   : > { %1333 = vadd.xlane.f32.xlu1 %v1304_v55  ;;  %1335 = vadd.xlane.f32.xlu0 %v1305_v57 }
 0x4ba   : > { %1337 = vadd.xlane.f32.xlu1 %v1306_v60 }
 0x523   : > { %v1308_v34 = vpop.xlane.xlu0 %1307 }
 0x524   : > { %v1339_v35 = vmax.f32 %v1308_v34, 1e-24 }
 0x526   : > { %3126 = vrsqrt.f32 %v1339_v35 }
 0x527   : > { %v1310_v37 = vpop.xlane.xlu1 %1309  ;;  %v1312_v9 = vpop.xlane.xlu0 %1311 }
 0x528   : > { %v1340_v39 = vmax.f32 %v1310_v37, 1e-24  ;;  %v1341_v0 = vmax.f32 %v1312_v9, 1e-24 }
 0x52a   : > { %3128 = vrsqrt.f32 %v1340_v39 }
 0x52b   : > { %3130 = vrsqrt.f32 %v1341_v0  ;;  %v1314_v59 = vpop.xlane.xlu1 %1313  ;;  %v1316_v4 = vpop.xlane.xlu0 %1315 }
 0x52c   : > { %v1342_v5 = vmax.f32 %v1314_v59, 1e-24  ;;  %v1343_v1 = vmax.f32 %v1316_v4, 1e-24 }
 0x52e   : > { %3132 = vrsqrt.f32 %v1342_v5 }
 0x52f   : > { %3134 = vrsqrt.f32 %v1343_v1  ;;  %v1318_v12 = vpop.xlane.xlu1 %1317  ;;  %v1320_v6 = vpop.xlane.xlu0 %1319 }
 0x530   : > { %v1344_v13 = vmax.f32 %v1318_v12, 1e-24  ;;  %v1345_v17 = vmax.f32 %v1320_v6, 1e-24 }
 0x532   : > { %3136 = vrsqrt.f32 %v1344_v13 }
 0x533   : > { %v3127_v19 = vpop.eup %3126  ;;  %3138 = vrsqrt.f32 %v1345_v17  ;;  %v1322_v8 = vpop.xlane.xlu1 %1321 }
 0x534   : > { %v1324_v20 = vpop.xlane.xlu0 %1323  ;;  %v1346_v22 = vmax.f32 %v1322_v8, 1e-24  ;;  %v1371_v26 = vmul.f32 %v3127_v19, %v3807_v36 }
 0x535   : > { %v1347_v25 = vmax.f32 %v1324_v20, 1e-24 }
 0x536   : > { %3140 = vrsqrt.f32 %v1346_v22  ;;  %v1387_v42 = vmax.f32 %v1371_v26, 0.0 }
 0x537   : > { %v3129_v27 = vpop.eup %3128  ;;  %3142 = vrsqrt.f32 %v1347_v25  ;;  %v1326_v46 = vpop.xlane.xlu1 %1325 }
 0x538   : > { %v1328_v30 = vpop.xlane.xlu0 %1327  ;;  %v3131_v31 = vpop.eup %3130  ;;  %v1348_v23 = vmax.f32 %v1326_v46, 1e-24  ;;  %v1372_v41 = vmul.f32 %v3129_v27, %v3815_v40 }
 0x539   : > { %v1349_v52 = vmax.f32 %v1328_v30, 1e-24  ;;  %v1373_v47 = vmul.f32 %v3131_v31, %v3810_v38 }
 0x53a   : > { %3144 = vrsqrt.f32 %v1348_v23  ;;  %v1388_v29 = vmax.f32 %v1372_v41, 0.0 }
 0x53b   : > { %v3133_v48 = vpop.eup %3132  ;;  %3146 = vrsqrt.f32 %v1349_v52  ;;  %v1330_v50 = vpop.xlane.xlu1 %1329  ;;  %v1389_v40 = vmax.f32 %v1373_v47, 0.0 }
 0x53c   : > { %v1332_v51 = vpop.xlane.xlu0 %1331  ;;  %v3135_v55 = vpop.eup %3134  ;;  %v1350_v36 = vmax.f32 %v1330_v50, 1e-24  ;;  %v3890_v56 = vpack.c.bf16 %v1388_v29, %v1387_v42  ;;  %v1374_v60 = vmul.f32 %v3133_v48, %v3818_v2 }
 0x53d   : > { %v1351_v57 = vmax.f32 %v1332_v51, 1e-24  ;;  %v1375_v62 = vmul.f32 %v3135_v55, %v3825_v7 }
 0x53e   : > { %3148 = vrsqrt.f32 %v1350_v36  ;;  %2772 = vmatprep.mubr.bf16.mxu0 %v3890_v56  ;;  %v1390_v61 = vmax.f32 %v1374_v60, 0.0 }
 0x53f   : > { %v3137_v34 = vpop.eup %3136  ;;  %3150 = vrsqrt.f32 %v1351_v57  ;;  %v1334_v38 = vpop.xlane.xlu1 %1333  ;;  %v1391_v2 = vmax.f32 %v1375_v62, 0.0 }
 0x540   : > { %v1336_v35 = vpop.xlane.xlu0 %1335  ;;  %v3139_v37 = vpop.eup %3138  ;;  %v1352_v9 = vmax.f32 %v1334_v38, 1e-24  ;;  %v3895_v0 = vpack.c.bf16 %v1390_v61, %v1389_v40  ;;  %v1376_v59 = vmul.f32 %v3137_v34, %v3835_v15 }
 0x541   : > { %v1353_v39 = vmax.f32 %v1336_v35, 1e-24  ;;  %v1377_v5 = vmul.f32 %v3139_v37, %v3828_v10 }
 0x542   : > { %3152 = vrsqrt.f32 %v1352_v9  ;;  %2773 = vmatmul.mubr.bf16.vlgmr.msra.gmra.mxu0 %v3895_v0  ;;  %v1392_v4 = vmax.f32 %v1376_v59, 0.0 }
 0x543   : > { %v3141_v1 = vpop.eup %3140  ;;  %3154 = vrsqrt.f32 %v1353_v39  ;;  %2821 = vmatpush3.bf16.msra.mxu0 %v3790_v28  ;;  %v1338_v7 = vpop.xlane.xlu1 %1337  ;;  %v1393_v17 = vmax.f32 %v1377_v5, 0.0  ;;  %v3190_v5 = vld [vmem:[%s3628_s16 + $0x8] sm:$0xff]  }
 0x544   : > { %v3143_v12 = vpop.eup %3142  ;;  %v1354_v6 = vmax.f32 %v1338_v7, 1e-24  ;;  %2822 = vmatprep.subr.bf16.mxu0 %v3408_v63  ;;  %v3902_v13 = vpack.c.bf16 %v1392_v4, %v1391_v2  ;;  %v1378_v15 = vmul.f32 %v3141_v1, %v3838_v14  ;;  %v3191_v1 = vld [vmem:[%s3628_s16 + $0x10] sm:$0xff]   ;;  %v3192_v7 = vld [vmem:[%s3628_s16 + $0x18] sm:$0xff]  }
 0x545   : > { %v1379_v10 = vmul.f32 %v3143_v12, %v3845_v24  ;;  %v3193_v12 = vld [vmem:[%s3628_s16 + $0x20] sm:$0xff]  }
 0x546   : > { %3156 = vrsqrt.f32 %v1354_v6  ;;  %2776 = vmatprep.mubr.bf16.mxu0 %v3902_v13  ;;  %v1394_v19 = vmax.f32 %v1378_v15, 0.0  ;;  %v3194_v6 = vld [vmem:[%s3628_s16 + $0x28] sm:$0xff]   ;;  %v3195_v15 = vld [vmem:[%s3628_s16 + $0x30] sm:$0xff]  }
 0x547   : > { %v3145_v8 = vpop.eup %3144  ;;  %2823 = vmatpush3.bf16.msra.mxu0 %v3786_v16  ;;  %v1395_v14 = vmax.f32 %v1379_v10, 0.0 }
 0x548   : > { %v3147_v28 = vpop.eup %3146  ;;  %2824 = vmatprep.subr.bf16.mxu0 %v3408_v63  ;;  %v3909_v20 = vpack.c.bf16 %v1394_v19, %v1393_v17  ;;  %v1380_v22 = vmul.f32 %v3145_v8, %v3855_v49  ;;  %v3196_v17 = vld [vmem:[%s3628_s16 + $0x38] sm:$0xff]   ;;  %s2278_s16 = sshll.u32 %s521_s27, 4  ;;  %s4097_s16 = int_to_ptr.vmem [resolvable:$true] %s2278_s16 }
 0x549   : > { %v1381_v26 = vmul.f32 %v3147_v28, %v3848_v21  ;;  %s3327_s20 = scalar_lea.vmem %s4097_s16, 256  ;;  %p3334_p7 = scmp.lt.s32.totalorder %s4097_s16, %s3332_s23 }
 0x54a   : > { %2777 = vmatmul.mubr.bf16.gmra.mxu0 %v3909_v20  ;;  %v1396_v25 = vmax.f32 %v1380_v22, 0.0  ;;  %p3328_p4 = scmp.ne.s32.totalorder %s4097_s16, %s3327_s20  ;;  %p3335_p11 = scmp.lt.s32.totalorder %s3333_s21, %s3327_s20 }
 0x54b   : > { %v3149_v27 = vpop.eup %3148  ;;  %2825 = vmatpush3.bf16.msra.mxu0 %v3781_v18  ;;  %v1397_v30 = vmax.f32 %v1381_v26, 0.0 }
 0x54c   : > { %v3151_v24 = vpop.eup %3150  ;;  %2826 = vmatprep.subr.bf16.mxu0 %v3408_v63  ;;  %v3916_v16 = vpack.c.bf16 %v1396_v25, %v1395_v14  ;;  %v1382_v46 = vmul.f32 %v3149_v27, %v3858_v44  ;;  %p3329_p9 = pnand %p3328_p4, %p3521_p5  ;;  %p3336_p13 = por %p3335_p11, %p3334_p7 }
 0x54d   : > { %v1383_v31 = vmul.f32 %v3151_v24, %v3865_v43 }
 0x54e   : > { %2780 = vmatprep.mubr.bf16.mxu0 %v3916_v16  ;;  %v1398_v49 = vmax.f32 %v1382_v46, 0.0  ;;  %p3330_p8 = pneg %p3329_p9 }
 0x54f   : > { %v3153_v23 = vpop.eup %3152  ;;  %2827 = vmatpush3.bf16.msra.mxu0 %v3776_v11  ;;  %v1399_v41 = vmax.f32 %v1383_v31, 0.0 }
 0x550   : > { %v3155_v21 = vpop.eup %3154  ;;  %2828 = vmatprep.subr.bf16.mxu0 %v3408_v63  ;;  %v3923_v18 = vpack.c.bf16 %v1398_v49, %v1397_v30  ;;  %v1384_v52 = vmul.f32 %v3153_v23, %v3875_v53  ;;  %p3337_p0 = pnand %p3336_p13, %p3330_p8 }
 0x551   : > { %v1385_v42 = vmul.f32 %v3155_v21, %v3868_v45 }
 0x552   : > { %2781 = vmatmul.mubr.bf16.gmra.mxu0 %v3923_v18  ;;  %v1400_v44 = vmax.f32 %v1384_v52, 0.0 }
 0x553   : > { %v3157_v29 = vpop.eup %3156  ;;  %2829 = vmatpush3.bf16.msra.mxu0 %v3771_v3  ;;  %v1401_v47 = vmax.f32 %v1385_v42, 0.0 }
 0x554   : > { %2830 = vmatprep.subr.bf16.mxu0 %v3408_v63  ;;  %v1409_v43 = vpack.c.bf16 %v1400_v44, %v1399_v41  ;;  %v1386_v11 = vmul.f32 %v3157_v29, %v3878_v54 }
 0x556   : > { %2784 = vmatprep.mubr.bf16.mxu0 %v1409_v43  ;;  %v1402_v48 = vmax.f32 %v1386_v11, 0.0 }
 0x557   : > { %2831 = vmatpush3.bf16.msra.mxu0 %v3766_v58 }
 0x558   : > { %2832 = vmatprep.subr.bf16.mxu0 %v3408_v63  ;;  %v1410_v53 = vpack.c.bf16 %v1402_v48, %v1401_v47 }
 0x55a   : > { %2785 = vmatmul.mubr.bf16.gmra.mxu0 %v1410_v53 }
 0x55b   : > { %2833 = vmatpush3.bf16.msra.mxu0 %v3759_v33  ;;  %2836 = vmatprep.mubr.msk.bf16.mxu0 %vm3409_vm1, %v3408_v63 }
 0x55c   : > { %2834 = vmatprep.subr.bf16.mxu0 %v3408_v63 }
 0x55f   : > { %2835 = vmatpush3.bf16.msra.mxu0 %v3757_v32 }
 0x560   : > { %2860 = vmatprep.subr.bf16.mxu0 %v3408_v63 }
 0x602   : > { %v2774_v3 = vpop.f32.mrf.mxu0 }
 0x604   : > { %v1509_v45 = vpop.f32.mrf.mxu0 }
 0x606   : > { %v2775_v54 = vpop.f32.mrf.mxu0 }
 0x607   : > { %v1573_v2 = vpack.c.bf16 %v2775_v54, %v2774_v3 }
 0x608   : > { %v1512_v50 = vpop.f32.mrf.mxu0 }
 0x609   : > { %v1572_v4 = vpack.c.bf16 %v1512_v50, %v1509_v45 }
 0x60a   : > { %v2778_v51 = vpop.f32.mrf.mxu0 }
 0x60c   : > { %v1525_v55 = vpop.f32.mrf.mxu0 }
 0x60e   : > { %v2779_v36 = vpop.f32.mrf.mxu0 }
 0x60f   : > { %v1575_v39 = vpack.c.bf16 %v2779_v36, %v2778_v51 }
 0x610   : > { %v1528_v58 = vpop.f32.mrf.mxu0 }
 0x611   : > { %v1574_v59 = vpack.c.bf16 %v1528_v58, %v1525_v55 }
 0x612   : > { %v2782_v57 = vpop.f32.mrf.mxu0 }
 0x614   : > { %v1541_v60 = vpop.f32.mrf.mxu0 }
 0x616   : > { %v2783_v40 = vpop.f32.mrf.mxu0 }
 0x617   : > { %v1577_v37 = vpack.c.bf16 %v2783_v40, %v2782_v57 }
 0x618   : > { %v1544_v61 = vpop.f32.mrf.mxu0 }
 0x619   : > { %v1576_v9 = vpack.c.bf16 %v1544_v61, %v1541_v60 }
 0x61a   : > { %v2786_v62 = vpop.f32.mrf.mxu0 }
 0x61c   : > { %v1557_v33 = vpop.f32.mrf.mxu0 }
 0x61e   : > { %v2787_v34 = vpop.f32.mrf.mxu0 }
 0x61f   : > { %v1579_v38 = vpack.c.bf16 %v2787_v34, %v2786_v62 }
 0x620   : > { %v1560_v35 = vpop.f32.mrf.mxu0 }
 0x621   : > { %v1578_v32 = vpack.c.bf16 %v1560_v35, %v1557_v33  ;;  %2788 = vmatprep.subr.bf16.mxu1 %v1579_v38  ;;  %v4021_v33 = vld [vmem:[%s4156_s12] sm:$0xff]  }
 0x622   : > { %2789 = vmatpush3.bf16.msra.mxu1 %v1579_v38  ;;  %2837 = vmatmul.mubr.bf16.vlgmr.msra.gmra.mxu0 %v4021_v33 }
 0x623   : > { %2790 = vmatprep.subr.bf16.mxu1 %v1578_v32  ;;  %2876 = vmatprep.mubr.msk.bf16.mxu0 %vm3409_vm1, %v3408_v63 }
 0x626   : > { %2791 = vmatpush3.bf16.msra.mxu1 %v1578_v32 }
 0x627   : > { %2792 = vmatprep.subr.bf16.mxu1 %v1577_v37 }
 0x62a   : > { %2793 = vmatpush3.bf16.msra.mxu1 %v1577_v37  ;;  %v3070_v37 = vld [vmem:[#allocation8 + $0x38] sm:$0xff]  }
 0x62b   : > { %2794 = vmatprep.subr.bf16.mxu1 %v1576_v9 }
 0x62e   : > { %2795 = vmatpush3.bf16.msra.mxu1 %v1576_v9  ;;  %v3072_v9 = vld [vmem:[#allocation8 + $0x30] sm:$0xff]  }
 0x62f   : > { %2796 = vmatprep.subr.bf16.mxu1 %v1575_v39 }
 0x632   : > { %2797 = vmatpush3.bf16.msra.mxu1 %v1575_v39  ;;  %v3074_v39 = vld [vmem:[#allocation8 + $0x28] sm:$0xff]  }
 0x633   : > { %2798 = vmatprep.subr.bf16.mxu1 %v1574_v59 }
 0x636   : > { %2799 = vmatpush3.bf16.msra.mxu1 %v1574_v59  ;;  %v3076_v59 = vld [vmem:[#allocation8 + $0x20] sm:$0xff]  }
 0x637   : > { %2800 = vmatprep.subr.bf16.mxu1 %v1573_v2 }
 0x63a   : > { %2801 = vmatpush3.bf16.msra.mxu1 %v1573_v2  ;;  %v3078_v2 = vld [vmem:[#allocation8 + $0x18] sm:$0xff]  }
 0x63b   : > { %2802 = vmatprep.subr.bf16.mxu1 %v1572_v4 }
 0x63e   : > { %2803 = vmatpush3.bf16.msra.mxu1 %v1572_v4  ;;  %v3080_v4 = vld [vmem:[#allocation8 + $0x10] sm:$0xff]  }
 0x63f   : > { %2840 = vmatprep.subr.bf16.mxu1 %v3408_v63 }
 0x641   : > { %2805 = vmatmul.mubr.bf16.vlgmr.msra.gmra.mxu1 %v3190_v5  ;;  %v3082_v5 = vld [vmem:[#allocation8 + $0x8] sm:$0xff]  }
 0x642   : > { %2841 = vmatpush3.bf16.msra.mxu1 %v1410_v53  ;;  %2808 = vmatprep.mubr.bf16.mxu1 %v3191_v1  ;;  %v3084_v1 = vld [vmem:[#allocation8] sm:$0xff]  }
 0x643   : > { %2842 = vmatprep.subr.bf16.mxu1 %v3408_v63 }
 0x646   : > { %2843 = vmatpush3.bf16.msra.mxu1 %v1409_v43 }
 0x647   : > { %2844 = vmatprep.subr.bf16.mxu1 %v3408_v63 }
 0x649   : > { %2809 = vmatmul.mubr.bf16.gmra.mxu1 %v3192_v7 }
 0x64a   : > { %2845 = vmatpush3.bf16.msra.mxu1 %v3923_v18  ;;  %2812 = vmatprep.mubr.bf16.mxu1 %v3193_v12 }
 0x64b   : > { %2846 = vmatprep.subr.bf16.mxu1 %v3408_v63 }
 0x64e   : > { %2847 = vmatpush3.bf16.msra.mxu1 %v3916_v16 }
 0x64f   : > { %2848 = vmatprep.subr.bf16.mxu1 %v3408_v63 }
 0x651   : > { %2813 = vmatmul.mubr.bf16.gmra.mxu1 %v3194_v6 }
 0x652   : > { %2849 = vmatpush3.bf16.msra.mxu1 %v3909_v20  ;;  %2816 = vmatprep.mubr.bf16.mxu1 %v3195_v15 }
 0x653   : > { %2850 = vmatprep.subr.bf16.mxu1 %v3408_v63 }
 0x656   : > { %2851 = vmatpush3.bf16.msra.mxu1 %v3902_v13 }
 0x657   : > { %2852 = vmatprep.subr.bf16.mxu1 %v3408_v63 }
 0x659   : > { %2817 = vmatmul.mubr.bf16.gmra.mxu1 %v3196_v17 }
 0x65a   : > { %2853 = vmatpush3.bf16.msra.mxu1 %v3895_v0  ;;  %v2464_v0 = vld [vmem:[%s4151_s7] ss:$0 sm:$0xff]  ;;  %2856 = vmatprep.mubr.msk.bf16.mxu1 %vm3409_vm1, %v3408_v63 }
 0x65b   : > { %2854 = vmatprep.subr.bf16.mxu1 %v3408_v63 }
 0x65e   : > { %2855 = vmatpush3.bf16.msra.mxu1 %v3890_v56 }
 0x65f   : > { %2880 = vmatprep.subr.bf16.mxu1 %v3408_v63 }
 0x661   : > { %2857 = vmatmul.mubr.bf16.vlgmr.msra.gmra.mxu1 %v4021_v33 }
 0x662   : > { %2896 = vmatprep.mubr.msk.bf16.mxu1 %vm3409_vm1, %v3408_v63  ;;  %2881 = vmatpush3.bf16.msra.mxu1 %v3070_v37 }
 0x663   : > { %2882 = vmatprep.subr.bf16.mxu1 %v3408_v63 }
 0x666   : > { %2883 = vmatpush3.bf16.msra.mxu1 %v3072_v9 }
 0x667   : > { %2884 = vmatprep.subr.bf16.mxu1 %v3408_v63 }
 0x66a   : > { %2885 = vmatpush3.bf16.msra.mxu1 %v3074_v39 }
 0x66b   : > { %2886 = vmatprep.subr.bf16.mxu1 %v3408_v63 }
 0x66e   : > { %2887 = vmatpush3.bf16.msra.mxu1 %v3076_v59 }
 0x66f   : > { %2888 = vmatprep.subr.bf16.mxu1 %v3408_v63 }
 0x672   : > { %2889 = vmatpush3.bf16.msra.mxu1 %v3078_v2 }
 0x673   : > { %2890 = vmatprep.subr.bf16.mxu1 %v3408_v63 }
 0x676   : > { %2891 = vmatpush3.bf16.msra.mxu1 %v3080_v4 }
 0x677   : > { %2892 = vmatprep.subr.bf16.mxu1 %v3408_v63 }
 0x67a   : > { %2893 = vmatpush3.bf16.msra.mxu1 %v3082_v5 }
 0x67b   : > { %2894 = vmatprep.subr.bf16.mxu1 %v3408_v63 }
 0x67e   : > { %2895 = vmatpush3.bf16.msra.mxu1 %v3084_v1 }
 0x67f   : > { %2920 = vmatprep.subr.bf16.mxu1 %v3408_v63 }
 0x701   : > { %v2806_v19 = vpop.f32.mrf.mxu1 }
 0x702   : > { %v4002_v55 = vadd.f32 %v2806_v19, %v2464_v0 }
 0x703   : > { %v1621_v10 = vpop.f32.mrf.mxu1 }
 0x704   : > { %v4010_v60 = vadd.f32 %v2464_v0, %v1621_v10  ;;  %v1686_v62 = vmul.f32 %v4002_v55, %v4002_v55 }
 0x705   : > { %v2807_v8 = vpop.f32.mrf.mxu1 }
 0x706   : > { %v4012_v40 = vadd.f32 %v2807_v8, %v2464_v0  ;;  %v1684_v35 = vmul.f32 %v4010_v60, %v4010_v60 }
 0x707   : > { %v1624_v28 = vpop.f32.mrf.mxu1 }
 0x708   : > { %v4023_v34 = vadd.f32 %v2464_v0, %v1624_v28  ;;  %v1687_v38 = vmul.f32 %v4012_v40, %v4012_v40 }
 0x709   : > { %v2810_v20 = vpop.f32.mrf.mxu1 }
 0x70a   : > { %v3986_v47 = vadd.f32 %v2810_v20, %v2464_v0  ;;  %v1685_v32 = vmul.f32 %v4023_v34, %v4023_v34 }
 0x70b   : > { %v1637_v22 = vpop.f32.mrf.mxu1 }
 0x70c   : > { %v3994_v45 = vadd.f32 %v2464_v0, %v1637_v22  ;;  %v1690_v51 = vmul.f32 %v3986_v47, %v3986_v47 }
 0x70d   : > { %v2811_v14 = vpop.f32.mrf.mxu1 }
 0x70e   : > { %v3996_v54 = vadd.f32 %v2811_v14, %v2464_v0  ;;  %v1688_v57 = vmul.f32 %v3994_v45, %v3994_v45 }
 0x70f   : > { %v1640_v13 = vpop.f32.mrf.mxu1 }
 0x710   : > { %v4004_v36 = vadd.f32 %v2464_v0, %v1640_v13  ;;  %v1691_v58 = vmul.f32 %v3996_v54, %v3996_v54 }
 0x711   : > { %v2814_v25 = vpop.f32.mrf.mxu1 }
 0x712   : > { %v3970_v18 = vadd.f32 %v2814_v25, %v2464_v0  ;;  %v1689_v61 = vmul.f32 %v4004_v36, %v4004_v36 }
 0x713   : > { %v1653_v26 = vpop.f32.mrf.mxu1 }
 0x714   : > { %v3978_v42 = vadd.f32 %v2464_v0, %v1653_v26  ;;  %v1694_v11 = vmul.f32 %v3970_v18, %v3970_v18 }
 0x715   : > { %v2815_v27 = vpop.f32.mrf.mxu1 }
 0x716   : > { %v3980_v29 = vadd.f32 %v2815_v27, %v2464_v0  ;;  %v1692_v3 = vmul.f32 %v3978_v42, %v3978_v42 }
 0x717   : > { %v1656_v24 = vpop.f32.mrf.mxu1 }
 0x718   : > { %v3988_v48 = vadd.f32 %v2464_v0, %v1656_v24  ;;  %v1695_v53 = vmul.f32 %v3980_v29, %v3980_v29 }
 0x719   : > { %v2818_v16 = vpop.f32.mrf.mxu1 }
 0x71a   : > { %v3962_v56 = vadd.f32 %v2818_v16, %v2464_v0  ;;  %v1693_v50 = vmul.f32 %v3988_v48, %v3988_v48 }
 0x71b   : > { %v1669_v46 = vpop.f32.mrf.mxu1 }
 0x71c   : > { %v3964_v30 = vadd.f32 %v2464_v0, %v1669_v46  ;;  %v1698_v49 = vmul.f32 %v3962_v56, %v3962_v56 }
 0x71d   : > { %v2819_v31 = vpop.f32.mrf.mxu1 }
 0x71e   : > { %v3968_v23 = vadd.f32 %v2819_v31, %v2464_v0  ;;  %1728 = vadd.xlane.f32.xlu0 %v1698_v49  ;;  %v1696_v44 = vmul.f32 %v3964_v30, %v3964_v30 }
 0x71f   : > { %v1672_v21 = vpop.f32.mrf.mxu1 }
 0x720   : > { %v3972_v52 = vadd.f32 %v2464_v0, %v1672_v21  ;;  %v1699_v41 = vmul.f32 %v3968_v23, %v3968_v23 }
 0x722   : > { %1730 = vadd.xlane.f32.xlu1 %v1699_v41  ;;  %1724 = vadd.xlane.f32.xlu0 %v1696_v44  ;;  %v1697_v43 = vmul.f32 %v3972_v52, %v3972_v52 }
 0x726   : > { %1726 = vadd.xlane.f32.xlu1 %v1697_v43  ;;  %1720 = vadd.xlane.f32.xlu0 %v1694_v11 }
 0x72a   : > { %1722 = vadd.xlane.f32.xlu1 %v1695_v53  ;;  %1716 = vadd.xlane.f32.xlu0 %v1692_v3 }
 0x72e   : > { %1718 = vadd.xlane.f32.xlu1 %v1693_v50  ;;  %1712 = vadd.xlane.f32.xlu0 %v1690_v51 }
 0x732   : > { %1714 = vadd.xlane.f32.xlu1 %v1691_v58  ;;  %1708 = vadd.xlane.f32.xlu0 %v1688_v57 }
 0x736   : > { %1710 = vadd.xlane.f32.xlu1 %v1689_v61  ;;  %1704 = vadd.xlane.f32.xlu0 %v1686_v62 }
 0x73a   : > { %1706 = vadd.xlane.f32.xlu1 %v1687_v38  ;;  %1700 = vadd.xlane.f32.xlu0 %v1684_v35 }
 0x73e   : > { %1702 = vadd.xlane.f32.xlu1 %v1685_v32 }
 0x7a7   : > { %v1729_v7 = vpop.xlane.xlu0 %1728 }
 0x7a8   : > { %v1746_v12 = vmax.f32 %v1729_v7, 1e-24 }
 0x7aa   : > { %3158 = vrsqrt.f32 %v1746_v12 }
 0x7ab   : > { %v1731_v6 = vpop.xlane.xlu1 %1730  ;;  %v1725_v15 = vpop.xlane.xlu0 %1724 }
 0x7ac   : > { %v1747_v17 = vmax.f32 %v1731_v6, 1e-24  ;;  %v1744_v19 = vmax.f32 %v1725_v15, 1e-24 }
 0x7ae   : > { %3160 = vrsqrt.f32 %v1747_v17 }
 0x7af   : > { %3162 = vrsqrt.f32 %v1744_v19  ;;  %v1727_v10 = vpop.xlane.xlu1 %1726  ;;  %v1721_v8 = vpop.xlane.xlu0 %1720 }
 0x7b0   : > { %v1745_v28 = vmax.f32 %v1727_v10, 1e-24  ;;  %v1742_v20 = vmax.f32 %v1721_v8, 1e-24 }
 0x7b2   : > { %3164 = vrsqrt.f32 %v1745_v28 }
 0x7b3   : > { %3166 = vrsqrt.f32 %v1742_v20  ;;  %v1723_v22 = vpop.xlane.xlu1 %1722  ;;  %v1717_v14 = vpop.xlane.xlu0 %1716 }
 0x7b4   : > { %v1743_v13 = vmax.f32 %v1723_v22, 1e-24  ;;  %v1740_v25 = vmax.f32 %v1717_v14, 1e-24 }
 0x7b6   : > { %3168 = vrsqrt.f32 %v1743_v13 }
 0x7b7   : > { %v3159_v26 = vpop.eup %3158  ;;  %3170 = vrsqrt.f32 %v1740_v25  ;;  %v1719_v27 = vpop.xlane.xlu1 %1718 }
 0x7b8   : > { %v1713_v24 = vpop.xlane.xlu0 %1712  ;;  %v1741_v0 = vmax.f32 %v1719_v27, 1e-24  ;;  %v1778_v46 = vmul.f32 %v3159_v26, %v3962_v56 }
 0x7b9   : > { %v1738_v16 = vmax.f32 %v1713_v24, 1e-24 }
 0x7ba   : > { %3172 = vrsqrt.f32 %v1741_v0  ;;  %v1794_v53 = vmax.f32 %v1778_v46, 0.0 }
 0x7bb   : > { %v3161_v49 = vpop.eup %3160  ;;  %3174 = vrsqrt.f32 %v1738_v16  ;;  %v1715_v31 = vpop.xlane.xlu1 %1714 }
 0x7bc   : > { %v1709_v21 = vpop.xlane.xlu0 %1708  ;;  %v3163_v41 = vpop.eup %3162  ;;  %v1739_v44 = vmax.f32 %v1715_v31, 1e-24  ;;  %v1779_v11 = vmul.f32 %v3161_v49, %v3968_v23 }
 0x7bd   : > { %v1736_v43 = vmax.f32 %v1709_v21, 1e-24  ;;  %v1776_v50 = vmul.f32 %v3163_v41, %v3964_v30 }
 0x7be   : > { %3176 = vrsqrt.f32 %v1739_v44  ;;  %v1795_v3 = vmax.f32 %v1779_v11, 0.0 }
 0x7bf   : > { %v3165_v51 = vpop.eup %3164  ;;  %3178 = vrsqrt.f32 %v1736_v43  ;;  %v1711_v58 = vpop.xlane.xlu1 %1710  ;;  %v1792_v32 = vmax.f32 %v1776_v50, 0.0  ;;  %v3071_v50 = vld [vmem:[#allocation7 + $0x38] sm:$0xff]  }
 0x7c0   : > { %v1705_v57 = vpop.xlane.xlu0 %1704  ;;  %v3167_v61 = vpop.eup %3166  ;;  %v1737_v56 = vmax.f32 %v1711_v58, 1e-24  ;;  %v1803_v38 = vpack.c.bf16 %v1795_v3, %v1794_v53  ;;  %v1777_v35 = vmul.f32 %v3165_v51, %v3972_v52  ;;  %v3079_v51 = vld [vmem:[#allocation7 + $0x18] sm:$0xff]   ;;  %v3083_v58 = vld [vmem:[#allocation7 + $0x8] sm:$0xff]  }
 0x7c1   : > { %v1734_v62 = vmax.f32 %v1705_v57, 1e-24  ;;  %v1774_v23 = vmul.f32 %v3167_v61, %v3970_v18  ;;  %v1844_v57 = vpop.f32.mrf.mxu0  ;;  %v1885_v61 = vpop.f32.mrf.mxu1 }
 0x7c2   : > { %3180 = vrsqrt.f32 %v1737_v56  ;;  %2861 = vmatpush3.bf16.msra.mxu0 %v1803_v38  ;;  %v1793_v37 = vmax.f32 %v1777_v35, 0.0  ;;  %v3085_v56 = vld [vmem:[#allocation7] sm:$0xff]  }
 0x7c3   : > { %v3169_v9 = vpop.eup %3168  ;;  %3182 = vrsqrt.f32 %v1734_v62  ;;  %v1707_v39 = vpop.xlane.xlu1 %1706  ;;  %2862 = vmatprep.subr.bf16.mxu0 %v3408_v63  ;;  %v1790_v52 = vmax.f32 %v1774_v23, 0.0 }
 0x7c4   : > { %v1701_v30 = vpop.xlane.xlu0 %1700  ;;  %v3171_v59 = vpop.eup %3170  ;;  %v1735_v2 = vmax.f32 %v1707_v39, 1e-24  ;;  %v1802_v5 = vpack.c.bf16 %v1793_v37, %v1792_v32  ;;  %v1775_v1 = vmul.f32 %v3169_v9, %v3980_v29  ;;  %v3086_v37 = vld [vmem:[#allocation10 + $0x38] sm:$0xff]  }
 0x7c5   : > { %v1732_v4 = vmax.f32 %v1701_v30, 1e-24  ;;  %v1772_v12 = vmul.f32 %v3171_v59, %v3978_v42  ;;  %v2838_v62 = vpop.f32.mrf.mxu0  ;;  %v2858_v38 = vpop.f32.mrf.mxu1  ;;  %v3087_v59 = vld [vmem:[#allocation10 + $0x30] sm:$0xff]  }
 0x7c6   : > { %3184 = vrsqrt.f32 %v1735_v2  ;;  %2863 = vmatpush3.bf16.msra.mxu0 %v1802_v5  ;;  %v1791_v7 = vmax.f32 %v1775_v1, 0.0  ;;  %v3088_v2 = vld [vmem:[#allocation10 + $0x28] sm:$0xff]   ;;  %v3090_v5 = vld [vmem:[#allocation10 + $0x18] sm:$0xff]   ;;  %v3091_v1 = vld [vmem:[#allocation10 + $0x10] sm:$0xff]  }
 0x7c7   : > { %v3173_v6 = vpop.eup %3172  ;;  %3186 = vrsqrt.f32 %v1732_v4  ;;  %v1703_v18 = vpop.xlane.xlu1 %1702  ;;  %2864 = vmatprep.subr.bf16.mxu0 %v3408_v63  ;;  %v1788_v8 = vmax.f32 %v1772_v12, 0.0  ;;  %v3089_v4 = vld [vmem:[#allocation10 + $0x20] sm:$0xff]  }
 0x7c8   : > { %v3175_v15 = vpop.eup %3174  ;;  %v1733_v17 = vmax.f32 %v1703_v18, 1e-24  ;;  %v1801_v19 = vpack.c.bf16 %v1791_v7, %v1790_v52  ;;  %v1773_v10 = vmul.f32 %v3173_v6, %v3988_v48  ;;  %v1847_v35 = vpop.f32.mrf.mxu0  ;;  %v3092_v52 = vld [vmem:[#allocation10 + $0x8] sm:$0xff]   ;;  %v3093_v7 = vld [vmem:[#allocation10] sm:$0xff]  }
 0x7c9   : > { %v1770_v28 = vmul.f32 %v3175_v15, %v3986_v47  ;;  %v1888_v32 = vpop.f32.mrf.mxu1  ;;  %v1933_v23 = vpack.c.bf16 %v1847_v35, %v1844_v57 }
 0x7ca   : > { %3188 = vrsqrt.f32 %v1733_v17  ;;  %2865 = vmatpush3.bf16.msra.mxu0 %v1801_v19  ;;  %v1789_v29 = vmax.f32 %v1773_v10, 0.0  ;;  %v1950_v9 = vpack.c.bf16 %v1888_v32, %v1885_v61  ;;  %v2839_v39 = vpop.f32.mrf.mxu0 }
 0x7cb   : > { %v3177_v20 = vpop.eup %3176  ;;  %2866 = vmatprep.subr.bf16.mxu0 %v3408_v63  ;;  %v1786_v13 = vmax.f32 %v1770_v28, 0.0  ;;  %v2859_v30 = vpop.f32.mrf.mxu1 }
 0x7cc   : > { %v3179_v42 = vpop.eup %3178  ;;  %v1800_v22 = vpack.c.bf16 %v1789_v29, %v1788_v8  ;;  %v1771_v14 = vmul.f32 %v3177_v20, %v3996_v54  ;;  %2897 = vmatmul.mubr.bf16.vlgmr.msra.gmra.mxu1 %v1950_v9 }
 0x7cd   : > { %v1768_v26 = vmul.f32 %v3179_v42, %v3994_v45  ;;  %2921 = vmatpush3.bf16.msra.mxu1 %v3086_v37  ;;  %2936 = vmatprep.mubr.msk.bf16.mxu1 %vm3409_vm1, %v3408_v63 }
 0x7ce   : > { %2867 = vmatpush3.bf16.msra.mxu0 %v1800_v22  ;;  %v1787_v25 = vmax.f32 %v1771_v14, 0.0  ;;  %2922 = vmatprep.subr.bf16.mxu1 %v3408_v63 }
 0x7cf   : > { %v3181_v27 = vpop.eup %3180  ;;  %2868 = vmatprep.subr.bf16.mxu0 %v3408_v63  ;;  %v1784_v47 = vmax.f32 %v1768_v26, 0.0 }
 0x7d0   : > { %v3183_v48 = vpop.eup %3182  ;;  %v1799_v24 = vpack.c.bf16 %v1787_v25, %v1786_v13  ;;  %v1769_v0 = vmul.f32 %v3181_v27, %v4004_v36  ;;  %v2490_v25 = vld [vmem:[%s4155_s11] ss:$0 sm:$0xff] }
 0x7d1   : > { %v1766_v46 = vmul.f32 %v3183_v48, %v4002_v55  ;;  %2923 = vmatpush3.bf16.msra.mxu1 %v3087_v59 }
 0x7d2   : > { %2869 = vmatpush3.bf16.msra.mxu0 %v1799_v24  ;;  %v1785_v16 = vmax.f32 %v1769_v0, 0.0  ;;  %2924 = vmatprep.subr.bf16.mxu1 %v3408_v63 }
 0x7d3   : > { %v3185_v49 = vpop.eup %3184  ;;  %2870 = vmatprep.subr.bf16.mxu0 %v3408_v63  ;;  %v1782_v45 = vmax.f32 %v1766_v46, 0.0 }
 0x7d4   : > { %v3187_v54 = vpop.eup %3186  ;;  %v1798_v31 = vpack.c.bf16 %v1785_v16, %v1784_v47  ;;  %v1767_v21 = vmul.f32 %v3185_v49, %v4012_v40  ;;  %v3075_v40 = vld [vmem:[#allocation7 + $0x28] sm:$0xff]  }
 0x7d5   : > { %v1764_v44 = vmul.f32 %v3187_v54, %v4010_v60  ;;  %v3073_v60 = vld [vmem:[#allocation7 + $0x30] sm:$0xff]   ;;  %2925 = vmatpush3.bf16.msra.mxu1 %v3088_v2 }
 0x7d6   : > { %2871 = vmatpush3.bf16.msra.mxu0 %v1798_v31  ;;  %v1783_v41 = vmax.f32 %v1767_v21, 0.0  ;;  %2926 = vmatprep.subr.bf16.mxu1 %v3408_v63 }
 0x7d7   : > { %v3189_v43 = vpop.eup %3188  ;;  %2872 = vmatprep.subr.bf16.mxu0 %v3408_v63  ;;  %v1780_v55 = vmax.f32 %v1764_v44, 0.0 }
 0x7d8   : > { %v1797_v36 = vpack.c.bf16 %v1783_v41, %v1782_v45  ;;  %v1765_v11 = vmul.f32 %v3189_v43, %v4023_v34  ;;  %v3077_v34 = vld [vmem:[#allocation7 + $0x20] sm:$0xff]  }
 0x7d9   : > { %2927 = vmatpush3.bf16.msra.mxu1 %v3089_v4 }
 0x7da   : > { %2873 = vmatpush3.bf16.msra.mxu0 %v1797_v36  ;;  %v1781_v53 = vmax.f32 %v1765_v11, 0.0  ;;  %2928 = vmatprep.subr.bf16.mxu1 %v3408_v63 }
 0x7db   : > { %2874 = vmatprep.subr.bf16.mxu0 %v3408_v63 }
 0x7dc   : > { %v1796_v3 = vpack.c.bf16 %v1781_v53, %v1780_v55 }
 0x7dd   : > { %2929 = vmatpush3.bf16.msra.mxu1 %v3090_v5 }
 0x7de   : > { %2875 = vmatpush3.bf16.msra.mxu0 %v1796_v3  ;;  %2930 = vmatprep.subr.bf16.mxu1 %v3408_v63 }
 0x7df   : > { %2900 = vmatprep.subr.bf16.mxu0 %v3408_v63 }
 0x7e1   : > { %2877 = vmatmul.mubr.bf16.vlgmr.msra.gmra.mxu0 %v4021_v33  ;;  %v3081_v33 = vld [vmem:[#allocation7 + $0x10] sm:$0xff]   ;;  %2931 = vmatpush3.bf16.msra.mxu1 %v3091_v1 }
 0x7e2   : > { %2901 = vmatpush3.bf16.msra.mxu0 %v3071_v50  ;;  %2916 = vmatprep.mubr.msk.bf16.mxu0 %vm3409_vm1, %v3408_v63 }
 0x7e3   : > { %2902 = vmatprep.subr.bf16.mxu0 %v3408_v63  ;;  %2932 = vmatprep.subr.bf16.mxu1 %v3408_v63 }
 0x7e5   : > { %2933 = vmatpush3.bf16.msra.mxu1 %v3092_v52 }
 0x7e6   : > { %2903 = vmatpush3.bf16.msra.mxu0 %v3073_v60  ;;  %2934 = vmatprep.subr.bf16.mxu1 %v3408_v63 }
 0x7e7   : > { %2904 = vmatprep.subr.bf16.mxu0 %v3408_v63 }
 0x7e9   : > { %2935 = vmatpush3.bf16.msra.mxu1 %v3093_v7 }
 0x7ea   : > { %2905 = vmatpush3.bf16.msra.mxu0 %v3075_v40 }
 0x7eb   : > { %2906 = vmatprep.subr.bf16.mxu0 %v3408_v63 }
 0x7ee   : > { %2907 = vmatpush3.bf16.msra.mxu0 %v3077_v34 }
 0x7ef   : > { %2908 = vmatprep.subr.bf16.mxu0 %v3408_v63 }
 0x7f2   : > { %2909 = vmatpush3.bf16.msra.mxu0 %v3079_v51 }
 0x7f3   : > { %2910 = vmatprep.subr.bf16.mxu0 %v3408_v63 }
 0x7f6   : > { %2911 = vmatpush3.bf16.msra.mxu0 %v3081_v33 }
 0x7f7   : > { %2912 = vmatprep.subr.bf16.mxu0 %v3408_v63 }
 0x7fa   : > { %2913 = vmatpush3.bf16.msra.mxu0 %v3083_v58 }
 0x7fb   : > { %2914 = vmatprep.subr.bf16.mxu0 %v3408_v63 }
 0x7fe   : > { %2915 = vmatpush3.bf16.msra.mxu0 %v3085_v56 }
 0x801   : > { %2917 = vmatmul.mubr.bf16.vlgmr.msra.gmra.mxu0 %v1933_v23 }
 0x88c   : > { %v2049_v19 = vpop.f32.mrf.mxu1 }
 0x88e   : > { %v2898_v29 = vpop.f32.mrf.mxu1 }
 0x890   : > { %v2052_v20 = vpop.f32.mrf.mxu1 }
 0x892   : > { %v2899_v14 = vpop.f32.mrf.mxu1 }
 0x8a1   : > { %v1926_v12 = vpop.f32.mrf.mxu0 }
 0x8a3   : > { %v2878_v6 = vpop.f32.mrf.mxu0 }
 0x8a5   : > { %v1929_v18 = vpop.f32.mrf.mxu0 }
 0x8a6   : > { %v2145_v15 = vpack.c.bf16 %v1929_v18, %v1926_v12 }
 0x8a7   : > { %v2879_v17 = vpop.f32.mrf.mxu0 }
 0x8a8   : > { %2937 = vmatmul.mubr.bf16.vlgmr.msra.gmra.mxu1 %v2145_v15 }
 0x8c1   : > { %v2138_v10 = vpop.f32.mrf.mxu0 }
 0x8c2   : > { %v2139_v8 = vadd.f32 %v2138_v10, %v2049_v19 }
 0x8c3   : > { %v2918_v28 = vpop.f32.mrf.mxu0 }
 0x8c5   : > { %v2141_v42 = vpop.f32.mrf.mxu0 }
 0x8c6   : > { %v2142_v22 = vadd.f32 %v2141_v42, %v2052_v20 }
 0x8c7   : > { %v2919_v63 = vpop.f32.mrf.mxu0 }
 0x968   : > { %v2244_v13 = vpop.f32.mrf.mxu1 }
 0x969   : > { %v2251_v26 = vadd.f32 %v2244_v13, %v2139_v8 }
 0x96a   : > { %v2938_v27 = vpop.f32.mrf.mxu1 }
 0x96b   : > { %v2260_v48 = vadd.f32 %v2490_v25, %v2251_v26 }
 0x96c   : > { %v2247_v24 = vpop.f32.mrf.mxu1 }
 0x96d   : > { %2262 = vst [vmem:[%s521_s27] sm:$0xff] %v2260_v48  ;;  %v2252_v0 = vadd.f32 %v2247_v24, %v2142_v22 }
 0x96e   : > { %v2939_v47 = vpop.f32.mrf.mxu1 }
 0x96f   : > { %v2261_v16 = vadd.f32 %v2490_v25, %v2252_v0 }
 0x971   : > { %2263 = vst [vmem:[%s521_s27 + $0x8] sm:$0xff] %v2261_v16 }
 0x972   : > { %3340 = shalt.err (!%p3337_p0)
}
 0x973   : > { %s3341_s24 = scalar_lea.hbm %s4102_s25, 256  ;;  %s3345_s15 = scalar_lea.hbm %s4157_s13, 512 }
 0x974   : > { %p3342_p3 = scmp.ne.s32.totalorder %s4102_s25, %s3341_s24  ;;  %p3346_p12 = scmp.lt.s32.totalorder %s4102_s25, %s4157_s13 }
 0x975   : > { %p3347_p10 = scmp.lt.s32.totalorder %s3345_s15, %s3341_s24 }
 0x976   : > { %p3343_p1 = pnand %p3342_p3, %p3521_p5 }
 0x977   : > { %p3348_p4 = por %p3347_p10, %p3346_p12 }
 0x978   : > { %p3344_p2 = pneg %p3343_p1 }
 0x97a   : > { %p3349_p9 = pnand %p3348_p4, %p3344_p2 }
 0x97c   : > { %3352 = shalt.err (!%p3349_p9)
}
 0x97d   : > { %s3411_s19 = smov 128   ;;  %s3412_s6 = smov 8  }
 0x97e   : > { %2960 = dma.vmem_to_hbm [thread:$0]  (%p3521_p5), %s4097_s16, 256, %s4102_s25, %s4104_s17, %s3411_s19, %s3411_s19, %s3412_s6  }
 0x97f PF: > { %s4182_s20 = sld [smem:[#allocation16_spill]]  ;;  %p2992_p8 = scmp.ge.s32.totalorder %s3399_s28, 2 }
 0x981   : > { %p2979_p7 = pnand %p2992_p8, %p3525_p6 }
 0x983   : > { %p2980_p11 = pneg %p2979_p7 }
 0x985   : > { %s2293_s23 = sand.u32 1, %s4182_s20  }
 0x986   : > { %s2294_s21 = scalar_lea.sflag [#allocation4], %s2293_s23 }
 0x987   : > { %3382 = dma.done.wait (%p2980_p11), %s2294_s21, 256  }
 0x988   : > { %3384 = vsyncadd (%p2980_p11), %s2294_s21, 4294967040  ;;  %s4184_s28 = sld [smem:[#allocation18_spill]]  ;;  %s4187_s25 = smov %s3391_s26 }
 0x989   : > { %s4185_s24 = sld [smem:[#allocation17_spill]] }
 0x98a   : > { %s4186_s27 = sld [smem:[#allocation19_spill]] }
 0x98e   : > { %p26_p13 = scmp.ge.s32.totalorder %s4184_s28, 4  }
 0x98f   : > { %s4188_s26 = smov %s4185_s24 }
 0x990   :  { %28 = sbr.rel (!%p26_p13) target bundleno = 8 (0x8), region = 131 }
 0x995   :  { %2299 = vsyncpa [#allocation3], 1 }
 0x996   :  { %2301 = vsyncpa [#allocation3 + $0x1], 1 }
 0x997   :  { %2302 = vsyncpa [#allocation6], 1 }
 0x998   :  { %2303 = vsyncpa [#allocation9], 1 }
 0x999   :  { %2304 = vsyncpa [#allocation4], 1 }
 0x99a   :  { %2306 = vsyncpa [#allocation4 + $0x1], 1 }

</bundles_post_ra>
